<compile_context>
chip_gen: v5e
topology: v5e:2x2
jax: 0.10.0
libtpu: 0.0.40
codegen_flags: <defaults>
</compile_context>

<pallas_src>
import jax
import jax.numpy as jnp
from jax.experimental import pallas as pl
from jax.experimental.pallas import tpu as pltpu

BETA = 10.0
THRESHOLD = 20.0  # torch.nn.Softplus default: beta*x > 20 -> linear


def _round_up(n, m):
    return ((n + m - 1) // m) * m


def _softplus(z):
    """Softplus with beta, matching torch.nn.Softplus(beta=10) semantics.
    Stable single-branch form: max(bz,0) + log1p(exp(-|bz|))."""
    bz = BETA * z
    sp = (jnp.maximum(bz, 0.0) + jnp.log1p(jnp.exp(-jnp.abs(bz)))) / BETA
    return jnp.where(bz > THRESHOLD, z, sp)


def fashion_nn_kernel(x_ref, w1_ref, b1_ref, w2_ref, b2_ref, w3_ref, b3_ref, o_ref):
    # Layer 1: Linear(input, 512pad) + Softplus(beta=10)   (bf16 MXU, f32 acc)
    h1 = jnp.dot(x_ref[...], w1_ref[...], preferred_element_type=jnp.float32)
    h1 = _softplus(h1 + b1_ref[...])
    # Layer 2: Linear(512pad, 256pad) + Softplus(beta=10)
    h2 = jnp.dot(h1.astype(w2_ref.dtype), w2_ref[...],
                 preferred_element_type=jnp.float32)
    h2 = _softplus(h2 + b2_ref[...])
    # Layer 3: Linear(256pad, 128pad), no activation. Lane-dense (128-wide) store.
    o_ref[...] = (
        jnp.dot(h2.astype(w3_ref.dtype), w3_ref[...],
                preferred_element_type=jnp.float32)
        + b3_ref[...]
    )


def prepare_params(w1, b1, w2, b2, w3, b3):
    """Take torch-convention weights (out, in) and 1-D biases; return
    transposed (in, out), lane/row zero-padded, bf16 weights + (1, out) f32 biases.

    Zero-padding the *rows* of w2/w3 for padded hidden features is what keeps the
    padding numerically free (Softplus(0) != 0)."""
    def pad_to(a, rows, cols):
        return jnp.pad(a, ((0, rows - a.shape[0]), (0, cols - a.shape[1])))

    in_d, h1_d = w1.shape[1], w1.shape[0]
    h2_d, out_d = w2.shape[0], w3.shape[0]

    in_p = _round_up(in_d, 128)
    h1_p = _round_up(h1_d, 128)   # 500 -> 512
    h2_p = _round_up(h2_d, 128)   # 150 -> 256
    out_p = _round_up(out_d, 128)  # 10  -> 128

    w1p = pad_to(w1.T, in_p, h1_p).astype(jnp.bfloat16)
    w2p = pad_to(w2.T, h1_p, h2_p).astype(jnp.bfloat16)
    w3p = pad_to(w3.T, h2_p, out_p).astype(jnp.bfloat16)
    b1p = pad_to(b1.reshape(1, -1), 1, h1_p).astype(jnp.float32)
    b2p = pad_to(b2.reshape(1, -1), 1, h2_p).astype(jnp.float32)
    b3p = pad_to(b3.reshape(1, -1), 1, out_p).astype(jnp.float32)
    return (w1p, b1p, w2p, b2p, w3p, b3p)


def fashion_nn_forward(x, w1p, b1p, w2p, b2p, w3p, b3p, output_size):
    """x: [B, input_size] float32. Params already padded/transposed (prepare_params)."""
    B, K = x.shape
    Kp = w1p.shape[0]
    Np = w3p.shape[1]

    # Pad input feature dim (zero rows in w1p make this a no-op numerically).
    if Kp != K:
        x = jnp.pad(x, ((0, 0), (0, Kp - K)))
    xb = x.astype(jnp.bfloat16)

    # Batch tiling: 128 rows fills the MXU; for tiny batches round up to a
    # bf16-friendly sublane multiple (16) so the block equals the padded array.
    TM = 128 if B >= 128 else _round_up(B, 16)
    Bp = _round_up(B, TM)
    if Bp != B:
        xb = jnp.pad(xb, ((0, Bp - B), (0, 0)))
    grid = (Bp // TM,)

    def resident(shape):
        # Weights / biases stay VMEM-resident across the whole batch grid.
        return pl.BlockSpec(shape, lambda i: (0, 0))

    out = pl.pallas_call(
        fashion_nn_kernel,
        out_shape=jax.ShapeDtypeStruct((Bp, Np), jnp.float32),
        grid_spec=pltpu.PrefetchScalarGridSpec(
            num_scalar_prefetch=0,
            grid=grid,
            in_specs=[
                pl.BlockSpec((TM, Kp), lambda i: (i, 0)),
                resident(w1p.shape), resident(b1p.shape),
                resident(w2p.shape), resident(b2p.shape),
                resident(w3p.shape), resident(b3p.shape),
            ],
            out_specs=pl.BlockSpec((TM, Np), lambda i: (i, 0)),
        ),
        compiler_params=pltpu.CompilerParams(
            dimension_semantics=("parallel",),
            vmem_limit_bytes=32 * 1024 * 1024,  # plenty; safe on v7x's 64 MiB too
        ),
    )(xb, w1p, b1p, w2p, b2p, w3p, b3p)

    return out[:B, :output_size]


def init_params(key, input_size, output_size):
    """Deterministic synthetic params in PyTorch nn.Linear convention:
    weight (out, in), bias (out,), uniform(-1/sqrt(in), 1/sqrt(in))."""
    dims = [(500, input_size), (150, 500), (output_size, 150)]
    keys = jax.random.split(key, 6)
    params = []
    for i, (out_d, in_d) in enumerate(dims):
        bound = 1.0 / jnp.sqrt(in_d)
        w = jax.random.uniform(keys[2 * i], (out_d, in_d), jnp.float32, -bound, bound)
        b = jax.random.uniform(keys[2 * i + 1], (out_d,), jnp.float32, -bound, bound)
        params.append((w, b))
    return params


if __name__ == "__main__":
    # Small shapes consistent with the module: flattened image input -> 10 classes.
    batch = 8
    input_size = 256   # e.g. a 16x16 flattened image
    output_size = 10

    key = jax.random.PRNGKey(0)
    k_x, k_p = jax.random.split(key)
    x = jax.random.normal(k_x, (batch, input_size), dtype=jnp.float32)

    (w1, b1), (w2, b2), (w3, b3) = init_params(k_p, input_size, output_size)
    w1p, b1p, w2p, b2p, w3p, b3p = prepare_params(w1, b1, w2, b2, w3, b3)

    out = fashion_nn_forward(x, w1p, b1p, w2p, b2p, w3p, b3p, output_size)
    out = jax.block_until_ready(out)
    assert out.shape == (batch, output_size)

    # Reference 1: pure-JAX mirror of the exact kernel math (bf16 MXU inputs,
    # f32 accumulation, padded weights) -> tight tolerance.
    def ref_matched(x):
        xb = jnp.pad(x, ((0, 0), (0, w1p.shape[0] - x.shape[1]))).astype(jnp.bfloat16)
        h1 = _softplus(jnp.dot(xb, w1p, preferred_element_type=jnp.float32) + b1p)
        h2 = _softplus(jnp.dot(h1.astype(jnp.bfloat16), w2p,
                               preferred_element_type=jnp.float32) + b2p)
        o = jnp.dot(h2.astype(jnp.bfloat16), w3p,
                    preferred_element_type=jnp.float32) + b3p
        return o[:, :output_size]

    ref_m = ref_matched(x)
    assert jnp.allclose(out, ref_m, atol=2e-3, rtol=2e-3), "mismatch vs matched ref"

    # Reference 2: full-f32 torch-equivalent math (unpadded) -> loose tolerance
    # covering the intentional bf16 weight/activation quantization.
    def ref_f32(x):
        h1 = _softplus(x @ w1.T + b1)
        h2 = _softplus(h1 @ w2.T + b2)
        return h2 @ w3.T + b3

    ref_f = ref_f32(x)
    assert jnp.allclose(out, ref_f, atol=5e-2, rtol=5e-2), "mismatch vs f32 ref"

    print("KERNEL_OK")
</pallas_src>

<mosaic_0001>
module attributes {stable_mosaic.version = 11 : i64} {
  func.func @fashion_nn_kernel(%arg0: i32, %arg1: memref<16x256xbf16, #tpu.memory_space<vmem>>, %arg2: memref<256x512xbf16, #tpu.memory_space<vmem>>, %arg3: memref<1x512xf32, #tpu.memory_space<vmem>>, %arg4: memref<512x256xbf16, #tpu.memory_space<vmem>>, %arg5: memref<1x256xf32, #tpu.memory_space<vmem>>, %arg6: memref<256x128xbf16, #tpu.memory_space<vmem>>, %arg7: memref<1x128xf32, #tpu.memory_space<vmem>>, %arg8: memref<16x128xf32, #tpu.memory_space<vmem>>) attributes {dimension_semantics = [#tpu.dimension_semantics<parallel>], iteration_bounds = array<i64: 1>, scalar_prefetch = 0 : i64, scratch_operands = 0 : i64, tpu.core_type = #tpu.core_type<tc>, window_params = [{transform_indices = @transform_0, window_bounds = array<i64: 16, 256>}, {pipeline_mode = #tpu.pipeline_mode<synchronous>, transform_indices = @transform_1, window_bounds = array<i64: 256, 512>}, {pipeline_mode = #tpu.pipeline_mode<synchronous>, transform_indices = @transform_2, window_bounds = array<i64: 1, 512>}, {pipeline_mode = #tpu.pipeline_mode<synchronous>, transform_indices = @transform_3, window_bounds = array<i64: 512, 256>}, {pipeline_mode = #tpu.pipeline_mode<synchronous>, transform_indices = @transform_4, window_bounds = array<i64: 1, 256>}, {pipeline_mode = #tpu.pipeline_mode<synchronous>, transform_indices = @transform_5, window_bounds = array<i64: 256, 128>}, {pipeline_mode = #tpu.pipeline_mode<synchronous>, transform_indices = @transform_6, window_bounds = array<i64: 1, 128>}, {transform_indices = @transform_7, window_bounds = array<i64: 16, 128>}]} {
    %c0 = arith.constant 0 : index
    %c0_0 = arith.constant 0 : index
    %0 = vector.load %arg1[%c0, %c0_0] : memref<16x256xbf16, #tpu.memory_space<vmem>>, vector<16x256xbf16>
    %c0_1 = arith.constant 0 : index
    %c0_2 = arith.constant 0 : index
    %1 = vector.load %arg2[%c0_1, %c0_2] : memref<256x512xbf16, #tpu.memory_space<vmem>>, vector<256x512xbf16>
    %cst = arith.constant dense<0.000000e+00> : vector<16x512xf32>
    %2 = tpu.matmul %0, %1, %cst {dimension_numbers = #tpu.dot_dimension_numbers<[1], [0], [0], [1], [0, 0, 1, 1], [], []>} : vector<16x256xbf16>, vector<256x512xbf16>, vector<16x512xf32> -> vector<16x512xf32>
    %c0_3 = arith.constant 0 : index
    %c0_4 = arith.constant 0 : index
    %3 = vector.load %arg3[%c0_3, %c0_4] : memref<1x512xf32, #tpu.memory_space<vmem>>, vector<1x512xf32>
    %4 = vector.broadcast %3 : vector<1x512xf32> to vector<16x512xf32>
    %5 = arith.addf %2, %4 : vector<16x512xf32>
    %cst_5 = arith.constant 1.000000e+01 : f32
    %6 = vector.broadcast %cst_5 : f32 to vector<16x512xf32>
    %7 = arith.mulf %6, %5 : vector<16x512xf32>
    %cst_6 = arith.constant 0.000000e+00 : f32
    %8 = vector.broadcast %cst_6 : f32 to vector<16x512xf32>
    %9 = arith.maximumf %7, %8 : vector<16x512xf32>
    %10 = math.absf %7 : vector<16x512xf32>
    %cst_7 = arith.constant 0.000000e+00 : f32
    %11 = vector.broadcast %cst_7 : f32 to vector<16x512xf32>
    %12 = arith.subf %11, %10 : vector<16x512xf32>
    %13 = math.exp %12 : vector<16x512xf32>
    %14 = math.log1p %13 : vector<16x512xf32>
    %15 = arith.addf %9, %14 : vector<16x512xf32>
    %cst_8 = arith.constant 1.000000e+01 : f32
    %16 = vector.broadcast %cst_8 : f32 to vector<16x512xf32>
    %17 = arith.divf %15, %16 : vector<16x512xf32>
    %cst_9 = arith.constant 2.000000e+01 : f32
    %18 = vector.broadcast %cst_9 : f32 to vector<16x512xf32>
    %19 = arith.cmpf ogt, %7, %18 : vector<16x512xf32>
    %20 = arith.select %19, %5, %17 : vector<16x512xi1>, vector<16x512xf32>
    %21 = arith.truncf %20 : vector<16x512xf32> to vector<16x512xbf16>
    %c0_10 = arith.constant 0 : index
    %c0_11 = arith.constant 0 : index
    %22 = vector.load %arg4[%c0_10, %c0_11] : memref<512x256xbf16, #tpu.memory_space<vmem>>, vector<512x256xbf16>
    %cst_12 = arith.constant dense<0.000000e+00> : vector<16x256xf32>
    %23 = tpu.matmul %21, %22, %cst_12 {dimension_numbers = #tpu.dot_dimension_numbers<[1], [0], [0], [1], [0, 0, 1, 1], [], []>} : vector<16x512xbf16>, vector<512x256xbf16>, vector<16x256xf32> -> vector<16x256xf32>
    %c0_13 = arith.constant 0 : index
    %c0_14 = arith.constant 0 : index
    %24 = vector.load %arg5[%c0_13, %c0_14] : memref<1x256xf32, #tpu.memory_space<vmem>>, vector<1x256xf32>
    %25 = vector.broadcast %24 : vector<1x256xf32> to vector<16x256xf32>
    %26 = arith.addf %23, %25 : vector<16x256xf32>
    %cst_15 = arith.constant 1.000000e+01 : f32
    %27 = vector.broadcast %cst_15 : f32 to vector<16x256xf32>
    %28 = arith.mulf %27, %26 : vector<16x256xf32>
    %cst_16 = arith.constant 0.000000e+00 : f32
    %29 = vector.broadcast %cst_16 : f32 to vector<16x256xf32>
    %30 = arith.maximumf %28, %29 : vector<16x256xf32>
    %31 = math.absf %28 : vector<16x256xf32>
    %cst_17 = arith.constant 0.000000e+00 : f32
    %32 = vector.broadcast %cst_17 : f32 to vector<16x256xf32>
    %33 = arith.subf %32, %31 : vector<16x256xf32>
    %34 = math.exp %33 : vector<16x256xf32>
    %35 = math.log1p %34 : vector<16x256xf32>
    %36 = arith.addf %30, %35 : vector<16x256xf32>
    %cst_18 = arith.constant 1.000000e+01 : f32
    %37 = vector.broadcast %cst_18 : f32 to vector<16x256xf32>
    %38 = arith.divf %36, %37 : vector<16x256xf32>
    %cst_19 = arith.constant 2.000000e+01 : f32
    %39 = vector.broadcast %cst_19 : f32 to vector<16x256xf32>
    %40 = arith.cmpf ogt, %28, %39 : vector<16x256xf32>
    %41 = arith.select %40, %26, %38 : vector<16x256xi1>, vector<16x256xf32>
    %42 = arith.truncf %41 : vector<16x256xf32> to vector<16x256xbf16>
    %c0_20 = arith.constant 0 : index
    %c0_21 = arith.constant 0 : index
    %43 = vector.load %arg6[%c0_20, %c0_21] : memref<256x128xbf16, #tpu.memory_space<vmem>>, vector<256x128xbf16>
    %cst_22 = arith.constant dense<0.000000e+00> : vector<16x128xf32>
    %44 = tpu.matmul %42, %43, %cst_22 {dimension_numbers = #tpu.dot_dimension_numbers<[1], [0], [0], [1], [0, 0, 1, 1], [], []>} : vector<16x256xbf16>, vector<256x128xbf16>, vector<16x128xf32> -> vector<16x128xf32>
    %c0_23 = arith.constant 0 : index
    %c0_24 = arith.constant 0 : index
    %45 = vector.load %arg7[%c0_23, %c0_24] : memref<1x128xf32, #tpu.memory_space<vmem>>, vector<1x128xf32>
    %46 = vector.broadcast %45 : vector<1x128xf32> to vector<16x128xf32>
    %47 = arith.addf %44, %46 : vector<16x128xf32>
    %c0_25 = arith.constant 0 : index
    %c0_26 = arith.constant 0 : index
    %48 = vector.load %arg8[%c0_25, %c0_26] : memref<16x128xf32, #tpu.memory_space<vmem>>, vector<16x128xf32>
    tpu.vector_store %arg8[%c0_25, %c0_26], %47 {strides = array<i32>} : memref<16x128xf32, #tpu.memory_space<vmem>>, vector<16x128xf32>,
    return
  }
  func.func @transform_0(%arg0: i32) -> (i32, i32) {
    %c0_i32 = arith.constant 0 : i32
    %c0_i32_0 = arith.constant 0 : i32
    return %arg0, %c0_i32 : i32, i32
  }
  func.func @transform_1(%arg0: i32) -> (i32, i32) {
    %c0_i32 = arith.constant 0 : i32
    %c0_i32_0 = arith.constant 0 : i32
    %c0_i32_1 = arith.constant 0 : i32
    return %c0_i32, %c0_i32_0 : i32, i32
  }
  func.func @transform_2(%arg0: i32) -> (i32, i32) {
    %c0_i32 = arith.constant 0 : i32
    %c0_i32_0 = arith.constant 0 : i32
    %c0_i32_1 = arith.constant 0 : i32
    return %c0_i32, %c0_i32_0 : i32, i32
  }
  func.func @transform_3(%arg0: i32) -> (i32, i32) {
    %c0_i32 = arith.constant 0 : i32
    %c0_i32_0 = arith.constant 0 : i32
    %c0_i32_1 = arith.constant 0 : i32
    return %c0_i32, %c0_i32_0 : i32, i32
  }
  func.func @transform_4(%arg0: i32) -> (i32, i32) {
    %c0_i32 = arith.constant 0 : i32
    %c0_i32_0 = arith.constant 0 : i32
    %c0_i32_1 = arith.constant 0 : i32
    return %c0_i32, %c0_i32_0 : i32, i32
  }
  func.func @transform_5(%arg0: i32) -> (i32, i32) {
    %c0_i32 = arith.constant 0 : i32
    %c0_i32_0 = arith.constant 0 : i32
    %c0_i32_1 = arith.constant 0 : i32
    return %c0_i32, %c0_i32_0 : i32, i32
  }
  func.func @transform_6(%arg0: i32) -> (i32, i32) {
    %c0_i32 = arith.constant 0 : i32
    %c0_i32_0 = arith.constant 0 : i32
    %c0_i32_1 = arith.constant 0 : i32
    return %c0_i32, %c0_i32_0 : i32, i32
  }
  func.func @transform_7(%arg0: i32) -> (i32, i32) {
    %c0_i32 = arith.constant 0 : i32
    %c0_i32_0 = arith.constant 0 : i32
    return %arg0, %c0_i32 : i32, i32
  }
}

</mosaic_0001>

<bundles_post_ra>
// kernel: tpu_custom_call.1
= control target key start
LH: loop header
LB: loop body
LE: loop exit
PB: predicated region body
PF: predicated region fallthrough
CT: control target
= control target key end

     0   :  { %12 = vsyncpa [#allocation3], 0  ;;  %s2806_s0 = inlined_call_operand.hbm [shape: bf16[16,256], index: 0, kind: input, shape index: {}]   ;;  %s2807_s1 = inlined_call_operand.hbm [shape: bf16[256,512], index: 1, kind: input, shape index: {}]   ;;  %s2808_s2 = inlined_call_operand.hbm [shape: f32[1,512], index: 2, kind: input, shape index: {}]   ;;  %s2809_s3 = inlined_call_operand.hbm [shape: bf16[512,256], index: 3, kind: input, shape index: {}]   ;;  %s2810_s4 = inlined_call_operand.vmem [shape: f32[1,256], index: 4, kind: input, shape index: {}]   ;;  %s2811_s5 = inlined_call_operand.hbm [shape: bf16[256,128], index: 5, kind: input, shape index: {}]   ;;  %s2812_s6 = inlined_call_operand.vmem [shape: f32[1,128], index: 6, kind: input, shape index: {}]   ;;  %s2813_s7 = inlined_call_operand.hbm [shape: f32[16,128], index: 7, kind: output, shape index: {}]  }
   0x1   :  { %13 = vsyncpa [#allocation6], 0 }
   0x2   :  { %14 = vsyncpa [#allocation9], 0  ;;  %s33_s26 = sshll.u32 %s2807_s1, 4  ;;  %s34_s26 = int_to_ptr.hbm [resolvable:$true] %s33_s26 }
   0x3   :  { %15 = vsyncpa [#allocation4], 0  ;;  %s2493_s27 = smov [#allocation5]   ;;  %s2494_s29 = smov 256  }
   0x4   :  { %s35_s28 = sshll.u32 %s2493_s27, 4  ;;  %s2495_s30 = smov 16   ;;  %s36_s28 = int_to_ptr.vmem [resolvable:$true] %s35_s28 }
   0x5   :  { %41 = dma.hbm_to_vmem [thread:$0]  %s34_s26, 8192, %s36_s28, [#allocation6], %s2494_s29, %s2494_s29, %s2495_s30  }
   0x6   :  { %s57_s10 = sshll.u32 %s2809_s3, 4  ;;  %s2496_s11 = smov [#allocation8]   ;;  %s58_s10 = int_to_ptr.hbm [resolvable:$true] %s57_s10 }
   0x7   :  { %s59_s12 = sshll.u32 %s2496_s11, 4  ;;  %s20_s15 = sshll.u32 %s2806_s0, 4  ;;  %s60_s12 = int_to_ptr.vmem [resolvable:$true] %s59_s12  ;;  %s21_s15 = int_to_ptr.hbm [resolvable:$true] %s20_s15 }
   0x8   :  { %s2497_s1 = smov 128   ;;  %s2498_s16 = smov 8  }
   0x9   :  { %65 = dma.hbm_to_vmem [thread:$0]  %s58_s10, 8192, %s60_s12, [#allocation9], %s2497_s1, %s2497_s1, %s2498_s16  }
   0xa   :  { %s47_s19 = sshll.u32 %s2808_s2, 4  ;;  %s2499_s3 = smov [#allocation2]   ;;  %s48_s19 = int_to_ptr.hbm [resolvable:$true] %s47_s19 }
   0xb   :  { %s22_s20 = sshll.u32 %s2499_s3, 4  ;;  %s2500_s0 = smov [#allocation7]   ;;  %s23_s20 = int_to_ptr.vmem [resolvable:$true] %s22_s20 }
   0xc   :  { %28 = dma.hbm_to_vmem [thread:$0]  %s21_s15, 256, %s23_s20, [#allocation3], %s2497_s1, %s2497_s1, %s2498_s16  }
   0xd   :  { %s49_s21 = sshll.u32 %s2500_s0, 4  ;;  %s72_s24 = sshll.u32 %s2811_s5, 4  ;;  %s50_s21 = int_to_ptr.vmem [resolvable:$true] %s49_s21  ;;  %s73_s24 = int_to_ptr.hbm [resolvable:$true] %s72_s24 }
   0xe   :  { %52 = dma.hbm_to_vmem [thread:$0]  %s48_s19, 64, %s50_s21, [#allocation6]  }
   0xf   :  { %s2501_s25 = smov [#allocation10]   ;;  %s2502_s2 = smov 64  }
  0x10   :  { %s74_s26 = sshll.u32 %s2501_s25, 4  ;;  %s2503_s27 = smov 4   ;;  %s75_s26 = int_to_ptr.vmem [resolvable:$true] %s74_s26 }
  0x11   :  { %80 = dma.hbm_to_vmem [thread:$0]  %s73_s24, 2048, %s75_s26, [#allocation9], %s2502_s2, %s2502_s2, %s2503_s27  }
  0x12   :  { %2485 = dma.done.wait [#allocation3], 256  }
  0x13   :  { %2486 = vsyncadd [#allocation3], 4294967040 }
  0x14   :  { %2487 = dma.done.wait [#allocation6], 8256  }
  0x15   :  { %2488 = vsyncadd [#allocation6], 4294959040 }
  0x16   :  { %2489 = dma.done.wait [#allocation9], 10240  }
  0x17   :  { %2490 = vsyncadd [#allocation9], 4294957056  ;;  %v1669_v0 = vld [vmem:[#allocation5 + $0xe0] sm:$0xf]  ;;  %v2163_v1 = vld [vmem:[#allocation5 + $0xec] sm:$0xf0] }
  0x18   :  { %v1797_v2 = vld [vmem:[#allocation5 + $0x1e0] sm:$0xf]  ;;  %v1670_v3 = vor.u32 %v2163_v1, %v1669_v0  ;;  %v2195_v4 = vld [vmem:[#allocation5 + $0x1ec] sm:$0xf0]  ;;  %v2161_v5 = vld [vmem:[#allocation5 + $0xe4] sm:$0xf] }
  0x19   :  { %v1671_v6 = vld [vmem:[#allocation5 + $0xf0] sm:$0xf0]  ;;  %v1798_v7 = vor.u32 %v2195_v4, %v1797_v2  ;;  %v2193_v9 = vld [vmem:[#allocation5 + $0x1e4] sm:$0xf]  ;;  %v1653_v11 = vld [vmem:[#allocation5 + $0xc0] sm:$0xf] }
  0x1a   :  { %v1674_v8 = vor.u32 %v2161_v5, %v1671_v6  ;;  %v1799_v10 = vld [vmem:[#allocation5 + $0x1f0] sm:$0xf0]  ;;  %509 = vmatpush.bf16.msra.mxu0 %v1670_v3  ;;  %v2159_v13 = vld [vmem:[#allocation5 + $0xcc] sm:$0xf0]  ;;  %v1781_v14 = vld [vmem:[#allocation5 + $0x1c0] sm:$0xf] }
  0x1b   :  { %v1802_v12 = vor.u32 %v2193_v9, %v1799_v10  ;;  %v2191_v15 = vld [vmem:[#allocation5 + $0x1cc] sm:$0xf0]  ;;  %523 = vmatpush.bf16.msra.mxu1 %v1798_v7  ;;  %v1654_v16 = vor.u32 %v2159_v13, %v1653_v11  ;;  %v2157_v18 = vld [vmem:[#allocation5 + $0xc4] sm:$0xf]  ;;  %v1655_v19 = vld [vmem:[#allocation5 + $0xd0] sm:$0xf0] }
  0x1c   :  { %537 = vmatpush.bf16.msra.mxu2 %v1674_v8  ;;  %v1782_v17 = vor.u32 %v2191_v15, %v1781_v14  ;;  %v2189_v20 = vld [vmem:[#allocation5 + $0x1c4] sm:$0xf]  ;;  %v1658_v21 = vor.u32 %v2157_v18, %v1655_v19  ;;  %v1783_v22 = vld [vmem:[#allocation5 + $0x1d0] sm:$0xf0]  ;;  %v1637_v23 = vld [vmem:[#allocation5 + $0xa0] sm:$0xf] }
  0x1d   :  { %551 = vmatpush.bf16.msra.mxu3 %v1802_v12  ;;  %v2155_v24 = vld [vmem:[#allocation5 + $0xac] sm:$0xf0]  ;;  %v1786_v25 = vor.u32 %v2189_v20, %v1783_v22  ;;  %v1765_v26 = vld [vmem:[#allocation5 + $0x1a0] sm:$0xf]  ;;  %v2153_v28 = vld [vmem:[#allocation5 + $0xa4] sm:$0xf] }
  0x1e   :  { %v2187_v27 = vld [vmem:[#allocation5 + $0x1ac] sm:$0xf0]  ;;  %510 = vmatpush.bf16.msra.mxu0 %v1654_v16  ;;  %v1638_v29 = vor.u32 %v2155_v24, %v1637_v23  ;;  %v1639_v30 = vld [vmem:[#allocation5 + $0xb0] sm:$0xf0]  ;;  %v2185_v31 = vld [vmem:[#allocation5 + $0x1a4] sm:$0xf] }
  0x1f   :  { %v1767_v32 = vld [vmem:[#allocation5 + $0x1b0] sm:$0xf0]  ;;  %524 = vmatpush.bf16.msra.mxu1 %v1782_v17  ;;  %v1766_v33 = vor.u32 %v2187_v27, %v1765_v26  ;;  %v1642_v34 = vor.u32 %v2153_v28, %v1639_v30  ;;  %v1621_v35 = vld [vmem:[#allocation5 + $0x80] sm:$0xf]  ;;  %v2151_v36 = vld [vmem:[#allocation5 + $0x8c] sm:$0xf0] }
  0x20   :  { %538 = vmatpush.bf16.msra.mxu2 %v1658_v21  ;;  %v1749_v37 = vld [vmem:[#allocation5 + $0x180] sm:$0xf]  ;;  %v1770_v38 = vor.u32 %v2185_v31, %v1767_v32  ;;  %v2183_v39 = vld [vmem:[#allocation5 + $0x18c] sm:$0xf0]  ;;  %v2149_v40 = vld [vmem:[#allocation5 + $0x84] sm:$0xf]  ;;  %v1622_v44 = vor.u32 %v2151_v36, %v1621_v35 }
  0x21   :  { %552 = vmatpush.bf16.msra.mxu3 %v1786_v25  ;;  %v1623_v41 = vld [vmem:[#allocation5 + $0x90] sm:$0xf0]  ;;  %v2181_v42 = vld [vmem:[#allocation5 + $0x184] sm:$0xf]  ;;  %v1750_v45 = vor.u32 %v2183_v39, %v1749_v37  ;;  %v1605_v47 = vld [vmem:[#allocation5 + $0x60] sm:$0xf] }
  0x22   :  { %v1751_v43 = vld [vmem:[#allocation5 + $0x190] sm:$0xf0]  ;;  %511 = vmatpush.bf16.msra.mxu0 %v1638_v29  ;;  %v1626_v46 = vor.u32 %v2149_v40, %v1623_v41  ;;  %v2147_v48 = vld [vmem:[#allocation5 + $0x6c] sm:$0xf0]  ;;  %v1733_v49 = vld [vmem:[#allocation5 + $0x160] sm:$0xf] }
  0x23   :  { %525 = vmatpush.bf16.msra.mxu1 %v1766_v33  ;;  %v1754_v50 = vor.u32 %v2181_v42, %v1751_v43  ;;  %v2179_v51 = vld [vmem:[#allocation5 + $0x16c] sm:$0xf0]  ;;  %v2145_v52 = vld [vmem:[#allocation5 + $0x64] sm:$0xf]  ;;  %v1607_v53 = vld [vmem:[#allocation5 + $0x70] sm:$0xf0]  ;;  %v1606_v56 = vor.u32 %v2147_v48, %v1605_v47 }
  0x24   :  { %539 = vmatpush.bf16.msra.mxu2 %v1642_v34  ;;  %v2177_v54 = vld [vmem:[#allocation5 + $0x164] sm:$0xf]  ;;  %v1735_v55 = vld [vmem:[#allocation5 + $0x170] sm:$0xf0]  ;;  %v1734_v57 = vor.u32 %v2179_v51, %v1733_v49  ;;  %v1610_v58 = vor.u32 %v2145_v52, %v1607_v53  ;;  %v1589_v59 = vld [vmem:[#allocation5 + $0x40] sm:$0xf] }
  0x25   :  { %553 = vmatpush.bf16.msra.mxu3 %v1770_v38  ;;  %v2143_v60 = vld [vmem:[#allocation5 + $0x4c] sm:$0xf0]  ;;  %v1717_v61 = vld [vmem:[#allocation5 + $0x140] sm:$0xf]  ;;  %v1738_v62 = vor.u32 %v2177_v54, %v1735_v55  ;;  %v2141_v0 = vld [vmem:[#allocation5 + $0x44] sm:$0xf] }
  0x26   :  { %512 = vmatpush.bf16.msra.mxu0 %v1622_v44  ;;  %v2175_v63 = vld [vmem:[#allocation5 + $0x14c] sm:$0xf0]  ;;  %v1591_v1 = vld [vmem:[#allocation5 + $0x50] sm:$0xf0]  ;;  %v2173_v2 = vld [vmem:[#allocation5 + $0x144] sm:$0xf]  ;;  %v1590_v4 = vor.u32 %v2143_v60, %v1589_v59 }
  0x27   :  { %526 = vmatpush.bf16.msra.mxu1 %v1750_v45  ;;  %v1719_v3 = vld [vmem:[#allocation5 + $0x150] sm:$0xf0]  ;;  %v1718_v5 = vor.u32 %v2175_v63, %v1717_v61  ;;  %v1594_v6 = vor.u32 %v2141_v0, %v1591_v1  ;;  %v1573_v7 = vld [vmem:[#allocation5 + $0x20] sm:$0xf]  ;;  %v2139_v8 = vld [vmem:[#allocation5 + $0x2c] sm:$0xf0] }
  0x28   :  { %540 = vmatpush.bf16.msra.mxu2 %v1626_v46  ;;  %v1701_v9 = vld [vmem:[#allocation5 + $0x120] sm:$0xf]  ;;  %v1722_v10 = vor.u32 %v2173_v2, %v1719_v3  ;;  %v2171_v11 = vld [vmem:[#allocation5 + $0x12c] sm:$0xf0]  ;;  %v2137_v12 = vld [vmem:[#allocation5 + $0x24] sm:$0xf]  ;;  %v1574_v16 = vor.u32 %v2139_v8, %v1573_v7 }
  0x29   :  { %554 = vmatpush.bf16.msra.mxu3 %v1754_v50  ;;  %v1575_v13 = vld [vmem:[#allocation5 + $0x30] sm:$0xf0]  ;;  %v2169_v14 = vld [vmem:[#allocation5 + $0x124] sm:$0xf]  ;;  %v1557_v17 = vld [vmem:[#allocation5] sm:$0xf]  ;;  %v1702_v20 = vor.u32 %v2171_v11, %v1701_v9 }
  0x2a   :  { %513 = vmatpush.bf16.msra.mxu0 %v1606_v56  ;;  %v1703_v15 = vld [vmem:[#allocation5 + $0x130] sm:$0xf0]  ;;  %v2135_v18 = vld [vmem:[#allocation5 + $0xc] sm:$0xf0]  ;;  %v1685_v19 = vld [vmem:[#allocation5 + $0x100] sm:$0xf]  ;;  %v1578_v21 = vor.u32 %v2137_v12, %v1575_v13 }
  0x2b   :  { %527 = vmatpush.bf16.msra.mxu1 %v1734_v57  ;;  %v2167_v22 = vld [vmem:[#allocation5 + $0x10c] sm:$0xf0]  ;;  %v2133_v23 = vld [vmem:[#allocation5 + $0x4] sm:$0xf]  ;;  %v1559_v24 = vld [vmem:[#allocation5 + $0x10] sm:$0xf0]  ;;  %v1706_v25 = vor.u32 %v2169_v14, %v1703_v15  ;;  %v1558_v32 = vor.u32 %v2135_v18, %v1557_v17 }
  0x2c   :  { %541 = vmatpush.bf16.msra.mxu2 %v1610_v58  ;;  %v2165_v26 = vld [vmem:[#allocation5 + $0x104] sm:$0xf]  ;;  %v1687_v27 = vld [vmem:[#allocation5 + $0x110] sm:$0xf0]  ;;  %v1677_v28 = vld [vmem:[#allocation5 + $0xe8] sm:$0xf]  ;;  %v1686_v36 = vor.u32 %v2167_v22, %v1685_v19  ;;  %v1562_v37 = vor.u32 %v2133_v23, %v1559_v24 }
  0x2d   :  { %555 = vmatpush.bf16.msra.mxu3 %v1738_v62  ;;  %v2164_v29 = vld [vmem:[#allocation5 + $0xf4] sm:$0xf0]  ;;  %v1805_v30 = vld [vmem:[#allocation5 + $0x1e8] sm:$0xf]  ;;  %v2162_v33 = vld [vmem:[#allocation5 + $0xec] sm:$0xf]  ;;  %v1690_v41 = vor.u32 %v2165_v26, %v1687_v27 }
  0x2e   :  { %514 = vmatpush.bf16.msra.mxu0 %v1590_v4  ;;  %v2196_v31 = vld [vmem:[#allocation5 + $0x1f4] sm:$0xf0]  ;;  %v1679_v34 = vld [vmem:[#allocation5 + $0xf8] sm:$0xf0]  ;;  %v2194_v35 = vld [vmem:[#allocation5 + $0x1ec] sm:$0xf]  ;;  %v1678_v42 = vor.u32 %v2164_v29, %v1677_v28 }
  0x2f   :  { %528 = vmatpush.bf16.msra.mxu1 %v1718_v5  ;;  %v1807_v38 = vld [vmem:[#allocation5 + $0x1f8] sm:$0xf0]  ;;  %v1549_v39 = vld [vmem:[#allocation2] sm:$0xf]  ;;  %v2132_v40 = vld [vmem:[#allocation2 + $0x4] sm:$0xf0]  ;;  %v1806_v45 = vor.u32 %v2196_v31, %v1805_v30  ;;  %v1682_v46 = vor.u32 %v2162_v33, %v1679_v34 }
  0x30   :  { %542 = vmatpush.bf16.msra.mxu2 %v1594_v6  ;;  %v2131_v43 = vld [vmem:[#allocation2 + $0x4] sm:$0xf]  ;;  %v1551_v44 = vld [vmem:[#allocation2 + $0x8] sm:$0xf0]  ;;  %v1661_v47 = vld [vmem:[#allocation5 + $0xc8] sm:$0xf]  ;;  %v1810_v50 = vor.u32 %v2194_v35, %v1807_v38  ;;  %v2567_v51 = vor.u32 %v2132_v40, %v1549_v39 }
  0x31   :  { %556 = vmatpush.bf16.msra.mxu3 %v1722_v10  ;;  %v2160_v48 = vld [vmem:[#allocation5 + $0xd4] sm:$0xf0]  ;;  %v1789_v49 = vld [vmem:[#allocation5 + $0x1c8] sm:$0xf]  ;;  %v2158_v53 = vld [vmem:[#allocation5 + $0xcc] sm:$0xf]  ;;  %v2569_v55 = vor.u32 %v2131_v43, %v1551_v44 }
  0x32   :  { %515 = vmatpush.bf16.msra.mxu0 %v1574_v16  ;;  %v2192_v52 = vld [vmem:[#allocation5 + $0x1d4] sm:$0xf0]  ;;  %v1663_v54 = vld [vmem:[#allocation5 + $0xd8] sm:$0xf0]  ;;  %v2190_v56 = vld [vmem:[#allocation5 + $0x1cc] sm:$0xf]  ;;  %v1662_v58 = vor.u32 %v2160_v48, %v1661_v47 }
  0x33   :  { %529 = vmatpush.bf16.msra.mxu1 %v1702_v20  ;;  %v1791_v57 = vld [vmem:[#allocation5 + $0x1d8] sm:$0xf0]  ;;  %v1790_v59 = vor.u32 %v2192_v52, %v1789_v49  ;;  %v1666_v60 = vor.u32 %v2158_v53, %v1663_v54  ;;  %v1645_v61 = vld [vmem:[#allocation5 + $0xa8] sm:$0xf]  ;;  %v2156_v62 = vld [vmem:[#allocation5 + $0xb4] sm:$0xf0] }
  0x34   :  { %543 = vmatpush.bf16.msra.mxu2 %v1578_v21  ;;  %v1773_v63 = vld [vmem:[#allocation5 + $0x1a8] sm:$0xf]  ;;  %v1794_v0 = vor.u32 %v2190_v56, %v1791_v57  ;;  %v2188_v1 = vld [vmem:[#allocation5 + $0x1b4] sm:$0xf0]  ;;  %v2154_v2 = vld [vmem:[#allocation5 + $0xac] sm:$0xf]  ;;  %v1646_v6 = vor.u32 %v2156_v62, %v1645_v61 }
  0x35   :  { %557 = vmatpush.bf16.msra.mxu3 %v1706_v25  ;;  %v1647_v3 = vld [vmem:[#allocation5 + $0xb8] sm:$0xf0]  ;;  %v2186_v4 = vld [vmem:[#allocation5 + $0x1ac] sm:$0xf]  ;;  %v1774_v7 = vor.u32 %v2188_v1, %v1773_v63  ;;  %v1629_v9 = vld [vmem:[#allocation5 + $0x88] sm:$0xf] }
  0x36   :  { %516 = vmatpush.bf16.msra.mxu0 %v1558_v32  ;;  %v1775_v5 = vld [vmem:[#allocation5 + $0x1b8] sm:$0xf0]  ;;  %v1650_v8 = vor.u32 %v2154_v2, %v1647_v3  ;;  %v2152_v10 = vld [vmem:[#allocation5 + $0x94] sm:$0xf0]  ;;  %v1757_v11 = vld [vmem:[#allocation5 + $0x188] sm:$0xf] }
  0x37   :  { %530 = vmatpush.bf16.msra.mxu1 %v1686_v36  ;;  %v1778_v12 = vor.u32 %v2186_v4, %v1775_v5  ;;  %v2184_v13 = vld [vmem:[#allocation5 + $0x194] sm:$0xf0]  ;;  %v2150_v14 = vld [vmem:[#allocation5 + $0x8c] sm:$0xf]  ;;  %v1631_v15 = vld [vmem:[#allocation5 + $0x98] sm:$0xf0]  ;;  %v1630_v18 = vor.u32 %v2152_v10, %v1629_v9 }
  0x38   :  { %544 = vmatpush.bf16.msra.mxu2 %v1562_v37  ;;  %v2182_v16 = vld [vmem:[#allocation5 + $0x18c] sm:$0xf]  ;;  %v1759_v17 = vld [vmem:[#allocation5 + $0x198] sm:$0xf0]  ;;  %v1758_v19 = vor.u32 %v2184_v13, %v1757_v11  ;;  %v1634_v20 = vor.u32 %v2150_v14, %v1631_v15  ;;  %v1613_v21 = vld [vmem:[#allocation5 + $0x68] sm:$0xf] }
  0x39   :  { %558 = vmatpush.bf16.msra.mxu3 %v1690_v41  ;;  %517 = vmatmul.bf16.vlgmr.msra.gmra.mxu0 %v2567_v51  ;;  %v2148_v22 = vld [vmem:[#allocation5 + $0x74] sm:$0xf0]  ;;  %v1741_v23 = vld [vmem:[#allocation5 + $0x168] sm:$0xf]  ;;  %v1762_v24 = vor.u32 %v2182_v16, %v1759_v17  ;;  %v2146_v26 = vld [vmem:[#allocation5 + $0x6c] sm:$0xf] }
  0x3a   :  { %565 = vmatpush.bf16.msrb.mxu0 %v1678_v42  ;;  %531 = vmatmul.bf16.vlgmr.msra.gmra.mxu1 %v2569_v55  ;;  %v2180_v25 = vld [vmem:[#allocation5 + $0x174] sm:$0xf0]  ;;  %v1615_v27 = vld [vmem:[#allocation5 + $0x78] sm:$0xf0]  ;;  %v2178_v28 = vld [vmem:[#allocation5 + $0x16c] sm:$0xf]  ;;  %v1614_v30 = vor.u32 %v2148_v22, %v1613_v21 }
  0x3b   :  { %579 = vmatpush.bf16.msrb.mxu1 %v1806_v45  ;;  %545 = vmatmul.bf16.vlgmr.msra.gmra.mxu2 %v2567_v51  ;;  %v1743_v29 = vld [vmem:[#allocation5 + $0x178] sm:$0xf0]  ;;  %v1742_v31 = vor.u32 %v2180_v25, %v1741_v23  ;;  %v1618_v32 = vor.u32 %v2146_v26, %v1615_v27  ;;  %v1597_v33 = vld [vmem:[#allocation5 + $0x48] sm:$0xf]  ;;  %v2144_v34 = vld [vmem:[#allocation5 + $0x54] sm:$0xf0] }
  0x3c   :  { %593 = vmatpush.bf16.msrb.mxu2 %v1682_v46  ;;  %559 = vmatmul.bf16.vlgmr.msra.gmra.mxu3 %v2569_v55  ;;  %v1725_v35 = vld [vmem:[#allocation5 + $0x148] sm:$0xf]  ;;  %v1746_v36 = vor.u32 %v2178_v28, %v1743_v29  ;;  %v2176_v37 = vld [vmem:[#allocation5 + $0x154] sm:$0xf0]  ;;  %v2142_v38 = vld [vmem:[#allocation5 + $0x4c] sm:$0xf]  ;;  %v1598_v42 = vor.u32 %v2144_v34, %v1597_v33 }
  0x3d   :  { %607 = vmatpush.bf16.msrb.mxu3 %v1810_v50  ;;  %v1599_v39 = vld [vmem:[#allocation5 + $0x58] sm:$0xf0]  ;;  %v2174_v40 = vld [vmem:[#allocation5 + $0x14c] sm:$0xf]  ;;  %v1726_v43 = vor.u32 %v2176_v37, %v1725_v35  ;;  %v1581_v45 = vld [vmem:[#allocation5 + $0x28] sm:$0xf] }
  0x3e   :  { %566 = vmatpush.bf16.msrb.mxu0 %v1662_v58  ;;  %v1727_v41 = vld [vmem:[#allocation5 + $0x158] sm:$0xf0]  ;;  %v1602_v44 = vor.u32 %v2142_v38, %v1599_v39  ;;  %v2140_v46 = vld [vmem:[#allocation5 + $0x34] sm:$0xf0]  ;;  %v1709_v47 = vld [vmem:[#allocation5 + $0x128] sm:$0xf] }
  0x3f   :  { %580 = vmatpush.bf16.msrb.mxu1 %v1790_v59  ;;  %v1730_v48 = vor.u32 %v2174_v40, %v1727_v41  ;;  %v2172_v49 = vld [vmem:[#allocation5 + $0x134] sm:$0xf0]  ;;  %v2138_v50 = vld [vmem:[#allocation5 + $0x2c] sm:$0xf]  ;;  %v1583_v52 = vld [vmem:[#allocation5 + $0x38] sm:$0xf0]  ;;  %v1582_v56 = vor.u32 %v2140_v46, %v1581_v45 }
  0x40   :  { %594 = vmatpush.bf16.msrb.mxu2 %v1666_v60  ;;  %v2170_v53 = vld [vmem:[#allocation5 + $0x12c] sm:$0xf]  ;;  %v1711_v54 = vld [vmem:[#allocation5 + $0x138] sm:$0xf0]  ;;  %v1710_v57 = vor.u32 %v2172_v49, %v1709_v47  ;;  %v1586_v58 = vor.u32 %v2138_v50, %v1583_v52  ;;  %v1565_v59 = vld [vmem:[#allocation5 + $0x8] sm:$0xf] }
  0x41   :  { %608 = vmatpush.bf16.msrb.mxu3 %v1794_v0  ;;  %v2136_v60 = vld [vmem:[#allocation5 + $0x14] sm:$0xf0]  ;;  %v1693_v61 = vld [vmem:[#allocation5 + $0x108] sm:$0xf]  ;;  %v1714_v62 = vor.u32 %v2170_v53, %v1711_v54  ;;  %v2134_v0 = vld [vmem:[#allocation5 + $0xc] sm:$0xf] }
  0x42   :  { %567 = vmatpush.bf16.msrb.mxu0 %v1646_v6  ;;  %v2168_v63 = vld [vmem:[#allocation5 + $0x114] sm:$0xf0]  ;;  %v1567_v1 = vld [vmem:[#allocation5 + $0x18] sm:$0xf0]  ;;  %v2166_v2 = vld [vmem:[#allocation5 + $0x10c] sm:$0xf]  ;;  %v1566_v4 = vor.u32 %v2136_v60, %v1565_v59 }
  0x43   :  { %581 = vmatpush.bf16.msrb.mxu1 %v1774_v7  ;;  %v1695_v3 = vld [vmem:[#allocation5 + $0x118] sm:$0xf0]  ;;  %v1694_v5 = vor.u32 %v2168_v63, %v1693_v61  ;;  %v1570_v6 = vor.u32 %v2134_v0, %v1567_v1  ;;  %v1861_v11 = vld [vmem:[#allocation8 + $0x60] sm:$0xf]  ;;  %v1933_v14 = vld [vmem:[#allocation8 + $0xf0] sm:$0xf] }
  0x44   :  { %595 = vmatpush.bf16.msrb.mxu2 %v1650_v8  ;;  %v1698_v7 = vor.u32 %v2166_v2, %v1695_v3  ;;  %v1869_v8 = vld [vmem:[#allocation8 + $0x70] sm:$0xf]  ;;  %v2212_v9 = vld [vmem:[#allocation8 + $0x74] sm:$0xf0]  ;;  %v2226_v21 = vld [vmem:[#allocation8 + $0xe4] sm:$0xf0] }
  0x45   :  { %609 = vmatpush.bf16.msrb.mxu3 %v1778_v12  ;;  %v1870_v10 = vor.u32 %v2212_v9, %v1869_v8  ;;  %v2210_v12 = vld [vmem:[#allocation8 + $0x64] sm:$0xf0]  ;;  %v2228_v15 = vld [vmem:[#allocation8 + $0xf4] sm:$0xf0]  ;;  %v1853_v17 = vld [vmem:[#allocation8 + $0x50] sm:$0xf] }
  0x46   :  { %568 = vmatpush.bf16.msrb.mxu0 %v1630_v18  ;;  %v1862_v13 = vor.u32 %v2210_v12, %v1861_v11  ;;  %v1934_v16 = vor.u32 %v2228_v15, %v1933_v14  ;;  %v2208_v18 = vld [vmem:[#allocation8 + $0x54] sm:$0xf0]  ;;  %v2206_v22 = vld [vmem:[#allocation8 + $0x44] sm:$0xf0]  ;;  %v1837_v27 = vld [vmem:[#allocation8 + $0x30] sm:$0xf] }
  0x47   :  { %582 = vmatpush.bf16.msrb.mxu1 %v1758_v19  ;;  %v1854_v19 = vor.u32 %v2208_v18, %v1853_v17  ;;  %v2224_v25 = vld [vmem:[#allocation8 + $0xd4] sm:$0xf0]  ;;  %v1829_v33 = vld [vmem:[#allocation8 + $0x20] sm:$0xf]  ;;  %v2202_v34 = vld [vmem:[#allocation8 + $0x24] sm:$0xf0] }
  0x48   :  { %596 = vmatpush.bf16.msrb.mxu2 %v1634_v20  ;;  %v1925_v20 = vld [vmem:[#allocation8 + $0xe0] sm:$0xf]  ;;  %v2204_v28 = vld [vmem:[#allocation8 + $0x34] sm:$0xf0]  ;;  %v1830_v35 = vor.u32 %v2202_v34, %v1829_v33  ;;  %v1901_v37 = vld [vmem:[#allocation8 + $0xb0] sm:$0xf] }
  0x49   :  { %610 = vmatpush.bf16.msrb.mxu3 %v1762_v24  ;;  %v1917_v24 = vld [vmem:[#allocation8 + $0xd0] sm:$0xf]  ;;  %v1838_v29 = vor.u32 %v2204_v28, %v1837_v27  ;;  %v2220_v38 = vld [vmem:[#allocation8 + $0xb4] sm:$0xf0]  ;;  %v2218_v45 = vld [vmem:[#allocation8 + $0xa4] sm:$0xf0] }
  0x4a   :  { %569 = vmatpush.bf16.msrb.mxu0 %v1614_v30  ;;  %v1918_v26 = vor.u32 %v2224_v25, %v1917_v24  ;;  %v1909_v30 = vld [vmem:[#allocation8 + $0xc0] sm:$0xf]  ;;  %v1902_v39 = vor.u32 %v2220_v38, %v1901_v37  ;;  %v1821_v40 = vld [vmem:[#allocation8 + $0x10] sm:$0xf]  ;;  %v2200_v41 = vld [vmem:[#allocation8 + $0x14] sm:$0xf0] }
  0x4b   :  { %583 = vmatpush.bf16.msrb.mxu1 %v1742_v31  ;;  %v2222_v31 = vld [vmem:[#allocation8 + $0xc4] sm:$0xf0]  ;;  %v1997_v54 = vld [vmem:[#allocation8 + $0x170] sm:$0xf]  ;;  %v1871_v59 = vld [vmem:[#allocation8 + $0x78] sm:$0xf0] }
  0x4c   :  { %597 = vmatpush.bf16.msrb.mxu2 %v1618_v32  ;;  %v1910_v32 = vor.u32 %v2222_v31, %v1909_v30  ;;  %v2198_v49 = vld [vmem:[#allocation8 + $0x4] sm:$0xf0]  ;;  %v1885_v60 = vld [vmem:[#allocation8 + $0x90] sm:$0xf]  ;;  %v2216_v61 = vld [vmem:[#allocation8 + $0x94] sm:$0xf0] }
  0x4d   :  { %611 = vmatpush.bf16.msrb.mxu3 %v1746_v36  ;;  %v2579_v36 = vld [vmem:[#allocation7] sm:$0xf]  ;;  %v1886_v0 = vor.u32 %v2216_v61, %v1885_v60  ;;  %v2504_v1 = vmov 10.0   ;;  %v1863_v8 = vld [vmem:[#allocation8 + $0x68] sm:$0xf0]  ;;  %s2505_s30 = smov [#allocation11]  }
  0x4e   :  { %570 = vmatpush.bf16.msrb.mxu0 %v1598_v42  ;;  %v171_v42 = vperm.slane %v2579_v36, 0  ;;  %2291 = vrcp.f32 %v2504_v1  ;;  %v172_v2 = vperm.slane %v2579_v36, 1  ;;  %v1877_v12 = vld [vmem:[#allocation8 + $0x80] sm:$0xf]  ;;  %v2061_v17 = vld [vmem:[#allocation8 + $0x1f0] sm:$0xf] }
  0x4f   :  { %584 = vmatpush.bf16.msrb.mxu1 %v1726_v43  ;;  %v1822_v43 = vor.u32 %v2200_v41, %v1821_v40  ;;  %v2260_v18 = vld [vmem:[#allocation8 + $0x1f4] sm:$0xf0]  ;;  %v1981_v27 = vld [vmem:[#allocation8 + $0x150] sm:$0xf]  ;;  %v1855_v33 = vld [vmem:[#allocation8 + $0x58] sm:$0xf0] }
  0x50   :  { %598 = vmatpush.bf16.msrb.mxu2 %v1602_v44  ;;  %v1893_v44 = vld [vmem:[#allocation8 + $0xa0] sm:$0xf]  ;;  %v2240_v28 = vld [vmem:[#allocation8 + $0x154] sm:$0xf0]  ;;  %v2258_v38 = vld [vmem:[#allocation8 + $0x1e4] sm:$0xf0] }
  0x51   :  { %612 = vmatpush.bf16.msrb.mxu3 %v1730_v48  ;;  %v1894_v46 = vor.u32 %v2218_v45, %v1893_v44  ;;  %v1813_v48 = vld [vmem:[#allocation8] sm:$0xf]  ;;  %v2045_v61 = vld [vmem:[#allocation8 + $0x1d0] sm:$0xf]  ;;  %s1530_s8 = sshll.u32 %s2505_s30, 4  ;;  %s1532_s11 = sshll.u32 %s2813_s7, 4  ;;  %s1531_s8 = int_to_ptr.vmem [resolvable:$true] %s1530_s8  ;;  %s1533_s11 = int_to_ptr.hbm [resolvable:$true] %s1532_s11 }
  0x52   :  { %571 = vmatpush.bf16.msrb.mxu0 %v1582_v56  ;;  %v1814_v53 = vor.u32 %v2198_v49, %v1813_v48  ;;  %v2244_v56 = vld [vmem:[#allocation8 + $0x174] sm:$0xf0]  ;;  %v2053_v37 = vld [vmem:[#allocation8 + $0x1e0] sm:$0xf]  ;;  %v2238_v49 = vld [vmem:[#allocation8 + $0x144] sm:$0xf0] }
  0x53   :  { %585 = vmatpush.bf16.msrb.mxu1 %v1710_v57  ;;  %v2211_v57 = vld [vmem:[#allocation8 + $0x74] sm:$0xf]  ;;  %v2054_v41 = vor.u32 %v2258_v38, %v2053_v37  ;;  %v1831_v37 = vld [vmem:[#allocation8 + $0x28] sm:$0xf0] }
  0x54   :  { %599 = vmatpush.bf16.msrb.mxu2 %v1586_v58  ;;  %v1998_v58 = vor.u32 %v2244_v56, %v1997_v54  ;;  %v1874_v63 = vor.u32 %v2211_v57, %v1871_v59  ;;  %v2589_v24 = vpop.eup %2291  ;;  %v2205_v56 = vld [vmem:[#allocation8 + $0x44] sm:$0xf]  ;;  %v1847_v57 = vld [vmem:[#allocation8 + $0x48] sm:$0xf0] }
  0x55   :  { %613 = vmatpush.bf16.msrb.mxu3 %v1714_v62  ;;  %v1850_v60 = vor.u32 %v2205_v56, %v1847_v57  ;;  %vm754_vm0 = vweird.f32 %v2589_v24 }
  0x56   :  { %572 = vmatpush.bf16.msrb.mxu0 %v1566_v4  ;;  %v1989_v4 = vld [vmem:[#allocation8 + $0x160] sm:$0xf] }
  0x57   :  { %586 = vmatpush.bf16.msrb.mxu1 %v1694_v5  ;;  %v2242_v5 = vld [vmem:[#allocation8 + $0x164] sm:$0xf0] }
  0x58   :  { %600 = vmatpush.bf16.msrb.mxu2 %v1570_v6  ;;  %v1990_v6 = vor.u32 %v2242_v5, %v1989_v4  ;;  %v2223_v5 = vld [vmem:[#allocation8 + $0xd4] sm:$0xf] }
  0x59   :  { %614 = vmatpush.bf16.msrb.mxu3 %v1698_v7  ;;  %573 = vmatmul.bf16.vlgmr.msrb.gmra.mxu0 %v2567_v51  ;;  %v2209_v7 = vld [vmem:[#allocation8 + $0x64] sm:$0xf] }
  0x5a   :  { %587 = vmatmul.bf16.vlgmr.msrb.gmra.mxu1 %v2569_v55  ;;  %1174 = vmatpush.bf16.msra.mxu0 %v1870_v10  ;;  %v1866_v11 = vor.u32 %v2209_v7, %v1863_v8 }
  0x5b   :  { %601 = vmatmul.bf16.vlgmr.msrb.gmra.mxu2 %v2567_v51  ;;  %1188 = vmatpush.bf16.msra.mxu1 %v1934_v16  ;;  %v1926_v51 = vor.u32 %v2226_v21, %v1925_v20  ;;  %v2214_v16 = vld [vmem:[#allocation8 + $0x84] sm:$0xf0] }
  0x5c   :  { %615 = vmatmul.bf16.vlgmr.msrb.gmra.mxu3 %v2569_v55  ;;  %v1845_v55 = vld [vmem:[#allocation8 + $0x40] sm:$0xf]  ;;  %1202 = vmatpush.bf16.msra.mxu2 %v1998_v58 }
  0x5d   :  { %v1846_v23 = vor.u32 %v2206_v22, %v1845_v55  ;;  %v2062_v55 = vor.u32 %v2260_v18, %v2061_v17  ;;  %v2227_v22 = vld [vmem:[#allocation8 + $0xf4] sm:$0xf]  ;;  %v2037_v17 = vld [vmem:[#allocation8 + $0x1c0] sm:$0xf] }
  0x5e   :  { %1175 = vmatpush.bf16.msra.mxu0 %v1862_v13 }
  0x5f   :  { %1189 = vmatpush.bf16.msra.mxu1 %v1926_v51  ;;  %v1878_v51 = vor.u32 %v2214_v16, %v1877_v12  ;;  %1216 = vmatpush.bf16.msra.mxu3 %v2062_v55  ;;  %v1839_v16 = vld [vmem:[#allocation8 + $0x38] sm:$0xf0] }
  0x60   :  { %1203 = vmatpush.bf16.msra.mxu2 %v1990_v6  ;;  %v1919_v6 = vld [vmem:[#allocation8 + $0xd8] sm:$0xf0] }
  0x62   :  { %1176 = vmatpush.bf16.msra.mxu0 %v1854_v19 }
  0x63   :  { %1190 = vmatpush.bf16.msra.mxu1 %v1918_v26  ;;  %1217 = vmatpush.bf16.msra.mxu3 %v2054_v41 }
  0x66   :  { %1177 = vmatpush.bf16.msra.mxu0 %v1846_v23  ;;  %v1935_v23 = vld [vmem:[#allocation8 + $0xf8] sm:$0xf0] }
  0x67   :  { %1191 = vmatpush.bf16.msra.mxu1 %v1910_v32  ;;  %v1938_v26 = vor.u32 %v2227_v22, %v1935_v23  ;;  %v1982_v32 = vor.u32 %v2240_v28, %v1981_v27  ;;  %v2221_v23 = vld [vmem:[#allocation8 + $0xc4] sm:$0xf]  ;;  %v1957_v27 = vld [vmem:[#allocation8 + $0x120] sm:$0xf]  ;;  %v2234_v28 = vld [vmem:[#allocation8 + $0x124] sm:$0xf0] }
  0x69   :  { %1204 = vmatpush.bf16.msra.mxu2 %v1982_v32 }
  0x6a   :  { %1178 = vmatpush.bf16.msra.mxu0 %v1838_v29  ;;  %v2207_v29 = vld [vmem:[#allocation8 + $0x54] sm:$0xf] }
  0x6b   :  { %1192 = vmatpush.bf16.msra.mxu1 %v1902_v39  ;;  %v750_v39 = vmul.f32 10.0, %v2589_v24 }
  0x6d   :  { %v751_v58 = vsub.f32 1.0, %v750_v39 }
  0x6e   :  { %1179 = vmatpush.bf16.msra.mxu0 %v1830_v35  ;;  %v1858_v35 = vor.u32 %v2207_v29, %v1855_v33  ;;  %v1958_v33 = vor.u32 %v2234_v28, %v1957_v27 }
  0x6f   :  { %1193 = vmatpush.bf16.msra.mxu1 %v1894_v46  ;;  %v1973_v46 = vld [vmem:[#allocation8 + $0x140] sm:$0xf] }
  0x70   :  { %v1974_v54 = vor.u32 %v2238_v49, %v1973_v46 }
  0x72   :  { %1180 = vmatpush.bf16.msra.mxu0 %v1822_v43  ;;  %v1927_v43 = vld [vmem:[#allocation8 + $0xe8] sm:$0xf0]  ;;  %1205 = vmatpush.bf16.msra.mxu2 %v1974_v54 }
  0x73   :  { %1194 = vmatpush.bf16.msra.mxu1 %v1886_v0 }
  0x76   :  { %1181 = vmatpush.bf16.msra.mxu0 %v1814_v53 }
  0x77   :  { %1195 = vmatpush.bf16.msra.mxu1 %v1878_v51 }
  0x7a   :  { %1230 = vmatpush.bf16.msrb.mxu0 %v1874_v63  ;;  %v2256_v63 = vld [vmem:[#allocation8 + $0x1d4] sm:$0xf0] }
  0x7b   :  { %1244 = vmatpush.bf16.msrb.mxu1 %v1938_v26  ;;  %v2046_v4 = vor.u32 %v2256_v63, %v2045_v61  ;;  %v1911_v26 = vld [vmem:[#allocation8 + $0xc8] sm:$0xf0] }
  0x7c   :  { %v1914_v32 = vor.u32 %v2221_v23, %v1911_v26 }
  0x7d   :  { %1218 = vmatpush.bf16.msra.mxu3 %v2046_v4 }
  0x7e   :  { %1231 = vmatpush.bf16.msrb.mxu0 %v1866_v11 }
  0x82   :  { %1232 = vmatpush.bf16.msrb.mxu0 %v1858_v35  ;;  %v2201_v35 = vld [vmem:[#allocation8 + $0x24] sm:$0xf] }
  0x86   :  { %1233 = vmatpush.bf16.msrb.mxu0 %v1850_v60 }
  0xb6   :  { %v518_v47 = vpop.f32.mrf.mxu0 }
  0xb7   :  { %v519_v50 = vadd.f32 %v518_v47, %v171_v42  ;;  %v532_v52 = vpop.f32.mrf.mxu1 }
  0xb9   :  { %v2582_v62 = vadd.f32 %v532_v52, %v519_v50 }
  0xbb   :  { %v2586_v3 = vmul.f32 10.0, %v2582_v62 }
  0xbd   :  { %v637_v9 = vand.u32 2147483647, %v2586_v3  ;;  %v629_v39 = vmax.f32 %v2586_v3, 0.0  ;;  %vm764_vm2 = vcmp.gt.f32.partialorder %v2586_v3, 20.0 }
  0xbe   :  { %v546_v10 = vpop.f32.mrf.mxu2  ;;  %v520_v14 = vpop.f32.mrf.mxu0 }
  0xbf   :  { %v547_v13 = vadd.f32 %v546_v10, %v172_v2  ;;  %v560_v15 = vpop.f32.mrf.mxu3  ;;  %v645_v19 = vsub.f32 0.0, %v637_v9  ;;  %v521_v20 = vadd.f32 %v520_v14, %v171_v42  ;;  %v534_v21 = vpop.f32.mrf.mxu1  ;;  %v2225_v42 = vld [vmem:[#allocation8 + $0xe4] sm:$0xf]  ;;  %v1965_v9 = vld [vmem:[#allocation8 + $0x130] sm:$0xf] }
  0xc0   :  { %v1930_v45 = vor.u32 %v2225_v42, %v1927_v43  ;;  %v2236_v10 = vld [vmem:[#allocation8 + $0x134] sm:$0xf0]  ;;  %v174_v42 = vperm.slane %v2579_v36, 3  ;;  %v1834_v43 = vor.u32 %v2201_v35, %v1831_v37 }
  0xc1   :  { %v2591_v25 = vadd.f32 %v560_v15, %v547_v13  ;;  %v653_v30 = vmul.f32 1.442695, %v645_v19  ;;  %v2593_v31 = vadd.f32 %v534_v21, %v521_v20  ;;  %v2203_v13 = vld [vmem:[#allocation8 + $0x34] sm:$0xf]  ;;  %v1966_v15 = vor.u32 %v2236_v10, %v1965_v9  ;;  %v2254_v21 = vld [vmem:[#allocation8 + $0x1c4] sm:$0xf0] }
  0xc2   :  { %1245 = vmatpush.bf16.msrb.mxu1 %v1930_v45  ;;  %v752_v19 = vmul.f32 %v2589_v24, %v751_v58  ;;  %v1842_v20 = vor.u32 %v2203_v13, %v1839_v16  ;;  %v2038_v22 = vor.u32 %v2254_v21, %v2037_v17  ;;  %v2252_v45 = vld [vmem:[#allocation8 + $0x1b4] sm:$0xf0]  ;;  %v2219_v58 = vld [vmem:[#allocation8 + $0xb4] sm:$0xf]  ;;  %v2021_v16 = vld [vmem:[#allocation8 + $0x1a0] sm:$0xf] }
  0xc3   :  { %v2596_v34 = vmul.f32 10.0, %v2591_v25  ;;  %2293 = vpow2.f32 %v653_v30  ;;  %v2600_v40 = vmul.f32 10.0, %v2593_v31  ;;  %1206 = vmatpush.bf16.msra.mxu2 %v1966_v15  ;;  %v173_v30 = vperm.slane %v2579_v36, 2  ;;  %v2232_v9 = vld [vmem:[#allocation8 + $0x114] sm:$0xf0] }
  0xc4   :  { %1234 = vmatpush.bf16.msrb.mxu0 %v1842_v20  ;;  %1219 = vmatpush.bf16.msra.mxu3 %v2038_v22  ;;  %v753_v41 = vadd.f32 %v2589_v24, %v752_v19  ;;  %v2199_v10 = vld [vmem:[#allocation8 + $0x14] sm:$0xf]  ;;  %v2250_v17 = vld [vmem:[#allocation8 + $0x1a4] sm:$0xf0] }
  0xc5   :  { %v638_v44 = vand.u32 2147483647, %v2596_v34  ;;  %v641_v47 = vand.u32 2147483647, %v2600_v40  ;;  %v2022_v21 = vor.u32 %v2250_v17, %v2021_v16  ;;  %v2230_v22 = vld [vmem:[#allocation8 + $0x104] sm:$0xf0] }
  0xc6   :  { %v548_v48 = vpop.f32.mrf.mxu2  ;;  %v2639_v19 = vsel %vm754_vm0, %v2589_v24, %v753_v41  ;;  %v630_v23 = vmax.f32 %v2596_v34, 0.0  ;;  %v633_v35 = vmax.f32 %v2600_v40, 0.0  ;;  %vm768_vm5 = vcmp.gt.f32.partialorder %v2600_v40, 20.0  ;;  %v1991_v16 = vld [vmem:[#allocation8 + $0x168] sm:$0xf0] }
  0xc7   :  { %v646_v50 = vsub.f32 0.0, %v638_v44  ;;  %v549_v52 = vadd.f32 %v548_v48, %v172_v2  ;;  %v562_v53 = vpop.f32.mrf.mxu3  ;;  %v649_v59 = vsub.f32 0.0, %v641_v47  ;;  %v1922_v2 = vor.u32 %v2223_v5, %v1919_v6  ;;  %v2029_v44 = vld [vmem:[#allocation8 + $0x1b0] sm:$0xf]  ;;  %1207 = vmatpush.bf16.msra.mxu2 %v1958_v33  ;;  %v2257_v40 = vld [vmem:[#allocation8 + $0x1e4] sm:$0xf] }
  0xc8   :  { %1235 = vmatpush.bf16.msrb.mxu0 %v1834_v43  ;;  %v2030_v57 = vor.u32 %v2252_v45, %v2029_v44  ;;  %v2243_v43 = vld [vmem:[#allocation8 + $0x174] sm:$0xf]  ;;  %v1999_v44 = vld [vmem:[#allocation8 + $0x178] sm:$0xf0]  ;;  %vm765_vm7 = vcmp.gt.f32.partialorder %v2596_v34, 20.0 }
  0xc9   :  { %v655_v0 = vmul.f32 1.442695, %v646_v50  ;;  %v2604_v1 = vadd.f32 %v562_v53, %v549_v52  ;;  %v2294_v7 = vpop.eup %2293  ;;  %v661_v8 = vmul.f32 1.442695, %v649_v59  ;;  %1246 = vmatpush.bf16.msrb.mxu1 %v1922_v2  ;;  %v1903_v59 = vld [vmem:[#allocation8 + $0xb8] sm:$0xf0] }
  0xca   :  { %v669_v11 = vadd.f32 1.0, %v2294_v7  ;;  %v672_v12 = vmul.f32 -0.5, %v2294_v7  ;;  %v675_v18 = vand.u32 2147483647, %v2294_v7  ;;  %1220 = vmatpush.bf16.msra.mxu3 %v2030_v57  ;;  %v1906_v2 = vor.u32 %v2219_v58, %v1903_v59 }
  0xcb   :  { %2295 = vpow2.f32 %v655_v0  ;;  %v2607_v14 = vmul.f32 10.0, %v2604_v1 }
  0xcc   :  { %2297 = vpow2.f32 %v661_v8  ;;  %v673_v51 = vadd.f32 1.0, %v672_v12  ;;  %vm2620_vm1 = vcmp.lt.f32.partialorder %v675_v18, 0.0004427343  ;;  %v2217_v18 = vld [vmem:[#allocation8 + $0xa4] sm:$0xf] }
  0xcd   :  { %2299 = vlog2.f32 %v669_v11  ;;  %v642_v55 = vand.u32 2147483647, %v2607_v14  ;;  %1247 = vmatpush.bf16.msrb.mxu1 %v1914_v32  ;;  %v1823_v11 = vld [vmem:[#allocation8 + $0x18] sm:$0xf0]  ;;  %v1815_v32 = vld [vmem:[#allocation8 + $0x8] sm:$0xf0] }
  0xce   :  { %v674_v53 = vmul.f32 %v2294_v7, %v673_v51  ;;  %v1949_v7 = vld [vmem:[#allocation8 + $0x110] sm:$0xf]  ;;  %v1826_v20 = vor.u32 %v2199_v10, %v1823_v11  ;;  %v1895_v51 = vld [vmem:[#allocation8 + $0xa8] sm:$0xf0]  ;;  %1221 = vmatpush.bf16.msra.mxu3 %v2022_v21  ;;  %v2005_v21 = vld [vmem:[#allocation8 + $0x180] sm:$0xf] }
  0xcf   :  { %v650_v29 = vsub.f32 0.0, %v642_v55  ;;  %v1950_v15 = vor.u32 %v2232_v9, %v1949_v7  ;;  %v1941_v55 = vld [vmem:[#allocation8 + $0x100] sm:$0xf]  ;;  %v1898_v27 = vor.u32 %v2217_v18, %v1895_v51  ;;  %v1887_v7 = vld [vmem:[#allocation8 + $0x98] sm:$0xf0]  ;;  %vm769_vm8 = vcmp.gt.f32.partialorder %v2607_v14, 20.0 }
  0xd0   :  { %v1942_v28 = vor.u32 %v2230_v22, %v1941_v55  ;;  %1236 = vmatpush.bf16.msrb.mxu0 %v1826_v20  ;;  %v2241_v9 = vld [vmem:[#allocation8 + $0x164] sm:$0xf]  ;;  %v2246_v51 = vld [vmem:[#allocation8 + $0x184] sm:$0xf0] }
  0xd1   :  { %v2613_v38 = vpop.eup %2295  ;;  %v663_v50 = vmul.f32 1.442695, %v650_v29  ;;  %1248 = vmatpush.bf16.msrb.mxu1 %v1906_v2  ;;  %1208 = vmatpush.bf16.msra.mxu2 %v1950_v15  ;;  %v2197_v29 = vld [vmem:[#allocation8 + $0x4] sm:$0xf]  ;;  %v1994_v3 = vor.u32 %v2241_v9, %v1991_v16  ;;  %v2235_v9 = vld [vmem:[#allocation8 + $0x134] sm:$0xf] }
  0xd2   :  { %v2618_v46 = vpop.eup %2297  ;;  %v678_v48 = vadd.f32 1.0, %v2613_v38  ;;  %v681_v49 = vmul.f32 -0.5, %v2613_v38  ;;  %v684_v61 = vand.u32 2147483647, %v2613_v38  ;;  %v1818_v41 = vor.u32 %v2197_v29, %v1815_v32  ;;  %v2213_v55 = vld [vmem:[#allocation8 + $0x84] sm:$0xf] }
  0xd3   :  { %v2300_v52 = vpop.eup %2299  ;;  %v705_v54 = vadd.f32 1.0, %v2618_v46  ;;  %v708_v56 = vmul.f32 -0.5, %v2618_v46  ;;  %v711_v63 = vand.u32 2147483647, %v2618_v46  ;;  %v1879_v32 = vld [vmem:[#allocation8 + $0x88] sm:$0xf0] }
  0xd4   :  { %v671_v60 = vmul.f32 0.6931472, %v2300_v52  ;;  %2301 = vlog2.f32 %v678_v48  ;;  %v682_v4 = vadd.f32 1.0, %v681_v49  ;;  %vm2656_vm4 = vcmp.lt.f32.partialorder %v684_v61, 0.0004427343  ;;  %1237 = vmatpush.bf16.msrb.mxu0 %v1818_v41 }
  0xd5   :  { %2303 = vlog2.f32 %v705_v54  ;;  %v709_v5 = vadd.f32 1.0, %v708_v56  ;;  %vm2649_vm3 = vcmp.lt.f32.partialorder %v711_v63, 0.0004427343  ;;  %1249 = vmatpush.bf16.msrb.mxu1 %v1898_v27  ;;  %1209 = vmatpush.bf16.msra.mxu2 %v1942_v28  ;;  %v2248_v63 = vld [vmem:[#allocation8 + $0x194] sm:$0xf0] }
  0xd6   :  { %v574_v0 = vpop.f32.mrf.mxu0  ;;  %2305 = vpow2.f32 %v663_v50  ;;  %v677_v12 = vsel %vm2620_vm1, %v674_v53, %v671_v60  ;;  %v683_v48 = vmul.f32 %v2613_v38, %v682_v4  ;;  %v2002_v38 = vor.u32 %v2243_v43, %v1999_v44  ;;  %v2013_v60 = vld [vmem:[#allocation8 + $0x190] sm:$0xf] }
  0xd7   :  { %v575_v6 = vadd.f32 %v574_v0, %v173_v30  ;;  %v588_v8 = vpop.f32.mrf.mxu1  ;;  %v741_v33 = vadd.f32 %v677_v12, %v629_v39  ;;  %v710_v37 = vmul.f32 %v2618_v46, %v709_v5  ;;  %v2014_v18 = vor.u32 %v2248_v63, %v2013_v60 }
  0xd9   :  { %v2634_v13 = vadd.f32 %v588_v8, %v575_v6  ;;  %v756_v61 = vmul.f32 %v2639_v19, %v741_v33  ;;  %1258 = vmatpush.bf16.msrb.mxu2 %v2002_v38  ;;  %v2215_v6 = vld [vmem:[#allocation8 + $0x94] sm:$0xf]  ;;  %1222 = vmatpush.bf16.msra.mxu3 %v2014_v18 }
  0xda   :  { %v2302_v24 = vpop.eup %2301  ;;  %v1890_v20 = vor.u32 %v2215_v6, %v1887_v7 }
  0xdb   :  { %v2644_v26 = vmul.f32 10.0, %v2634_v13  ;;  %v2304_v45 = vpop.eup %2303  ;;  %v680_v47 = vmul.f32 0.6931472, %v2302_v24  ;;  %v772_v22 = vsel %vm764_vm2, %v2582_v62, %v756_v61  ;;  %v2259_v24 = vld [vmem:[#allocation8 + $0x1f4] sm:$0xf] }
  0xdc   :  { %v2654_v52 = vpop.eup %2305  ;;  %v707_v53 = vmul.f32 0.6931472, %v2304_v45  ;;  %1250 = vmatpush.bf16.msrb.mxu1 %v1890_v20  ;;  %v2063_v62 = vld [vmem:[#allocation8 + $0x1f8] sm:$0xf0]  ;;  %v2006_v45 = vor.u32 %v2246_v51, %v2005_v21 }
  0xdd   :  { %v639_v50 = vand.u32 2147483647, %v2644_v26  ;;  %v714_v57 = vadd.f32 1.0, %v2654_v52  ;;  %v717_v58 = vmul.f32 -0.5, %v2654_v52  ;;  %v686_v8 = vsel %vm2656_vm4, %v683_v48, %v680_v47  ;;  %v1983_v47 = vld [vmem:[#allocation8 + $0x158] sm:$0xf0]  ;;  %1259 = vmatpush.bf16.msrb.mxu2 %v1994_v3 }
  0xde   :  { %v602_v39 = vpop.f32.mrf.mxu2  ;;  %v576_v59 = vpop.f32.mrf.mxu0  ;;  %v713_v0 = vsel %vm2649_vm3, %v710_v37, %v707_v53  ;;  %v742_v27 = vadd.f32 %v686_v8, %v630_v23  ;;  %v720_v33 = vand.u32 2147483647, %v2654_v52  ;;  %v2239_v23 = vld [vmem:[#allocation8 + $0x154] sm:$0xf]  ;;  %v2055_v53 = vld [vmem:[#allocation8 + $0x1e8] sm:$0xf0]  ;;  %1223 = vmatpush.bf16.msra.mxu3 %v2006_v45 }
  0xdf   :  { %v603_v54 = vadd.f32 %v602_v39, %v174_v42  ;;  %v616_v56 = vpop.f32.mrf.mxu3  ;;  %v647_v4 = vsub.f32 0.0, %v639_v50  ;;  %v745_v2 = vadd.f32 %v713_v0, %v633_v35  ;;  %2307 = vlog2.f32 %v714_v57  ;;  %v590_v29 = vpop.f32.mrf.mxu1  ;;  %v2255_v0 = vld [vmem:[#allocation8 + $0x1d4] sm:$0xf] }
  0xe0   :  { %v718_v10 = vadd.f32 1.0, %v717_v58  ;;  %v577_v15 = vadd.f32 %v576_v59, %v173_v30  ;;  %v1882_v50 = vor.u32 %v2213_v55, %v1879_v32  ;;  %v2066_v39 = vor.u32 %v2259_v24, %v2063_v62  ;;  %v2233_v32 = vld [vmem:[#allocation8 + $0x124] sm:$0xf]  ;;  %v2231_v3 = vld [vmem:[#allocation8 + $0x114] sm:$0xf] }
  0xe1   :  { %v2667_v5 = vadd.f32 %v616_v56, %v603_v54  ;;  %v657_v11 = vmul.f32 1.442695, %v647_v4  ;;  %v760_v17 = vmul.f32 %v2639_v19, %v745_v2  ;;  %v1986_v46 = vor.u32 %v2239_v23, %v1983_v47  ;;  %v2237_v54 = vld [vmem:[#allocation8 + $0x144] sm:$0xf]  ;;  %v2047_v2 = vld [vmem:[#allocation8 + $0x1d8] sm:$0xf0] }
  0xe2   :  { %v2686_v35 = vadd.f32 %v590_v29, %v577_v15  ;;  %v719_v38 = vmul.f32 %v2654_v52, %v718_v10  ;;  %v634_v58 = vmax.f32 %v2607_v14, 0.0  ;;  %vm721_vm6 = vcmp.lt.f32.partialorder %v720_v33, 0.0004427343  ;;  %1251 = vmatpush.bf16.msrb.mxu1 %v1882_v50  ;;  %1272 = vmatpush.bf16.msrb.mxu3 %v2066_v39  ;;  %v1967_v15 = vld [vmem:[#allocation8 + $0x138] sm:$0xf0] }
  0xe3   :  { %v2673_v12 = vmul.f32 10.0, %v2667_v5  ;;  %2309 = vpow2.f32 %v657_v11  ;;  %v776_v30 = vsel %vm768_vm5, %v2593_v31, %v760_v17  ;;  %v2058_v52 = vor.u32 %v2257_v40, %v2055_v53  ;;  %1260 = vmatpush.bf16.msrb.mxu2 %v1986_v46  ;;  %v1959_v14 = vld [vmem:[#allocation8 + $0x128] sm:$0xf0]  ;;  %v2251_v33 = vld [vmem:[#allocation8 + $0x1b4] sm:$0xf] }
  0xe4   :  { %v2688_v41 = vpack.c.bf16 %v776_v30, %v772_v22  ;;  %v2693_v48 = vmul.f32 10.0, %v2686_v35  ;;  %v757_v4 = vmul.f32 %v2639_v19, %v742_v27  ;;  %v2050_v20 = vor.u32 %v2255_v0, %v2047_v2  ;;  %v2253_v22 = vld [vmem:[#allocation8 + $0x1c4] sm:$0xf]  ;;  %v2039_v27 = vld [vmem:[#allocation8 + $0x1c8] sm:$0xf0] }
  0xe5   :  { %v640_v28 = vand.u32 2147483647, %v2673_v12  ;;  %v2308_v31 = vpop.eup %2307  ;;  %v1970_v55 = vor.u32 %v2235_v9, %v1967_v15  ;;  %v1951_v62 = vld [vmem:[#allocation8 + $0x118] sm:$0xf0]  ;;  %v2023_v39 = vld [vmem:[#allocation8 + $0x1a8] sm:$0xf0] }
  0xe6   :  { %v604_v37 = vpop.f32.mrf.mxu2  ;;  %v716_v56 = vmul.f32 0.6931472, %v2308_v31  ;;  %1182 = vmatmul.bf16.vlgmr.msra.gmra.mxu0 %v2688_v41  ;;  %v643_v59 = vand.u32 2147483647, %v2693_v48  ;;  %1273 = vmatpush.bf16.msrb.mxu3 %v2058_v52  ;;  %v773_v21 = vsel %vm765_vm7, %v2591_v25, %v757_v4  ;;  %v2042_v25 = vor.u32 %v2253_v22, %v2039_v27  ;;  %v2249_v31 = vld [vmem:[#allocation8 + $0x1a4] sm:$0xf] }
  0xe7   :  { %v648_v43 = vsub.f32 0.0, %v640_v28  ;;  %v605_v44 = vadd.f32 %v604_v37, %v174_v42  ;;  %v618_v49 = vpop.f32.mrf.mxu3  ;;  %v1975_v42 = vld [vmem:[#allocation8 + $0x148] sm:$0xf0]  ;;  %v2031_v37 = vld [vmem:[#allocation8 + $0x1b8] sm:$0xf0]  ;;  %v1954_v50 = vor.u32 %v2231_v3, %v1951_v62  ;;  %v2026_v0 = vor.u32 %v2249_v31, %v2023_v39 }
  0xe8   :  { %v722_v63 = vsel %vm721_vm6, %v719_v38, %v716_v56  ;;  %v1978_v8 = vor.u32 %v2237_v54, %v1975_v42  ;;  %v651_v10 = vsub.f32 0.0, %v643_v59  ;;  %v2034_v40 = vor.u32 %v2251_v33, %v2031_v37  ;;  %v2229_v46 = vld [vmem:[#allocation8 + $0x104] sm:$0xf]  ;;  %v1943_v38 = vld [vmem:[#allocation8 + $0x108] sm:$0xf0]  ;;  %v2264_v42 = vld [vmem:[#allocation10 + $0x18] sm:$0xff] }
  0xe9   :  { %v659_v57 = vmul.f32 1.442695, %v648_v43  ;;  %v2696_v36 = vadd.f32 %v618_v49, %v605_v44  ;;  %v2701_v60 = vpop.eup %2309  ;;  %v746_v6 = vadd.f32 %v722_v63, %v634_v58  ;;  %v2247_v4 = vld [vmem:[#allocation8 + $0x194] sm:$0xf]  ;;  %v632_v22 = vmax.f32 %v2673_v12, 0.0 }
  0xea   :  { %v687_v7 = vadd.f32 1.0, %v2701_v60  ;;  %v665_v17 = vmul.f32 1.442695, %v651_v10  ;;  %1261 = vmatpush.bf16.msrb.mxu2 %v1978_v8  ;;  %v690_v30 = vmul.f32 -0.5, %v2701_v60  ;;  %1274 = vmatpush.bf16.msrb.mxu3 %v2050_v20  ;;  %v693_v43 = vand.u32 2147483647, %v2701_v60 }
  0xeb   :  { %2311 = vpow2.f32 %v659_v57  ;;  %v2704_v61 = vmul.f32 10.0, %v2696_v36  ;;  %v761_v16 = vmul.f32 %v2639_v19, %v746_v6  ;;  %v1946_v8 = vor.u32 %v2229_v46, %v1943_v38  ;;  %v2753_v39 = vld [vmem:[%s2810_s4] sm:$0x3]  ;;  %v2265_v46 = vld [vmem:[#allocation10 + $0x20] sm:$0xff] }
  0xec   :  { %2313 = vlog2.f32 %v687_v7  ;;  %v691_v47 = vadd.f32 1.0, %v690_v30  ;;  %vm2720_vm9 = vcmp.lt.f32.partialorder %v693_v43, 0.0004427343  ;;  %v631_v10 = vmax.f32 %v2644_v26, 0.0 }
  0xed   :  { %v644_v11 = vand.u32 2147483647, %v2704_v61  ;;  %v777_v51 = vsel %vm769_vm8, %v2604_v1, %v761_v16  ;;  %2315 = vpow2.f32 %v665_v17  ;;  %v1962_v1 = vor.u32 %v2233_v32, %v1959_v14 }
  0xee   :  { %v2714_v29 = vpack.c.bf16 %v777_v51, %v773_v21  ;;  %1262 = vmatpush.bf16.msrb.mxu2 %v1970_v55  ;;  %1275 = vmatpush.bf16.msrb.mxu3 %v2042_v25  ;;  %v692_v59 = vmul.f32 %v2701_v60, %v691_v47  ;;  %v2245_v51 = vld [vmem:[#allocation8 + $0x184] sm:$0xf]  ;;  %v2007_v55 = vld [vmem:[#allocation8 + $0x188] sm:$0xf0]  ;;  %v635_v32 = vmax.f32 %v2693_v48, 0.0  ;;  %v636_v62 = vmax.f32 %v2704_v61, 0.0 }
  0xef   :  { %v652_v18 = vsub.f32 0.0, %v644_v11  ;;  %v2010_v25 = vor.u32 %v2245_v51, %v2007_v55  ;;  %vm766_vm13 = vcmp.gt.f32.partialorder %v2644_v26, 20.0  ;;  %vm770_vm14 = vcmp.gt.f32.partialorder %v2693_v48, 20.0  ;;  %v2268_v48 = vld [vmem:[#allocation10 + $0x38] sm:$0xff]  ;;  %v2274_v60 = vld [vmem:[#allocation10 + $0x68] sm:$0xff]  ;;  %v2261_v55 = vld [vmem:[#allocation10] sm:$0xff] }
  0xf0   :  { %1196 = vmatmul.bf16.vlgmr.msra.gmra.mxu1 %v2714_v29  ;;  %vm767_vm15 = vcmp.gt.f32.partialorder %v2673_v12, 20.0  ;;  %vm771_vm0 = vcmp.gt.f32.partialorder %v2704_v61, 20.0  ;;  %1496 = vmatpush.bf16.msra.mxu0 %v2268_v48  ;;  %v2266_v61 = vld [vmem:[#allocation10 + $0x28] sm:$0xff] }
  0xf1   :  { %v2312_v28 = vpop.eup %2311  ;;  %v667_v34 = vmul.f32 1.442695, %v652_v18 }
  0xf2   :  { %v696_v24 = vadd.f32 1.0, %v2312_v28  ;;  %v2314_v23 = vpop.eup %2313  ;;  %v699_v44 = vmul.f32 -0.5, %v2312_v28  ;;  %1263 = vmatpush.bf16.msrb.mxu2 %v1962_v1  ;;  %v702_v63 = vand.u32 2147483647, %v2312_v28  ;;  %1276 = vmatpush.bf16.msrb.mxu3 %v2034_v40 }
  0xf3   :  { %2317 = vpow2.f32 %v667_v34  ;;  %v2316_v45 = vpop.eup %2315  ;;  %v689_v54 = vmul.f32 0.6931472, %v2314_v23 }
  0xf4   :  { %2319 = vlog2.f32 %v696_v24  ;;  %v723_v49 = vadd.f32 1.0, %v2316_v45  ;;  %v726_v56 = vmul.f32 -0.5, %v2316_v45  ;;  %v700_v58 = vadd.f32 1.0, %v699_v44 }
  0xf5   :  { %v695_v2 = vsel %vm2720_vm9, %v692_v59, %v689_v54  ;;  %v729_v15 = vand.u32 2147483647, %v2316_v45  ;;  %vm2728_vm10 = vcmp.lt.f32.partialorder %v702_v63, 0.0004427343 }
  0xf6   :  { %1238 = vmatmul.bf16.vlgmr.msrb.gmra.mxu0 %v2688_v41  ;;  %2321 = vlog2.f32 %v723_v49  ;;  %1264 = vmatpush.bf16.msrb.mxu2 %v1954_v50  ;;  %v2015_v41 = vld [vmem:[#allocation8 + $0x198] sm:$0xf0]  ;;  %v727_v9 = vadd.f32 1.0, %v726_v56  ;;  %v701_v11 = vmul.f32 %v2312_v28, %v700_v58  ;;  %v743_v18 = vadd.f32 %v695_v2, %v631_v10 }
  0xf7   :  { %1277 = vmatpush.bf16.msrb.mxu3 %v2026_v0  ;;  %v2018_v16 = vor.u32 %v2247_v4, %v2015_v41  ;;  %vm730_vm11 = vcmp.lt.f32.partialorder %v729_v15, 0.0004427343  ;;  %v2276_v58 = vld [vmem:[#allocation10 + $0x78] sm:$0xff]  ;;  %v2263_v4 = vld [vmem:[#allocation10 + $0x10] sm:$0xff]  ;;  %v2262_v15 = vld [vmem:[#allocation10 + $0x8] sm:$0xff] }
  0xf8   :  { %v728_v28 = vmul.f32 %v2316_v45, %v727_v9  ;;  %v758_v1 = vmul.f32 %v2639_v19, %v743_v18  ;;  %1510 = vmatpush.bf16.msra.mxu1 %v2276_v58  ;;  %v851_v9 = vperm.slane %v2753_v39, 1 }
  0xf9   :  { %v2318_v53 = vpop.eup %2317 }
  0xfa   :  { %v2320_v57 = vpop.eup %2319  ;;  %v732_v52 = vadd.f32 1.0, %v2318_v53  ;;  %v735_v7 = vmul.f32 -0.5, %v2318_v53  ;;  %1265 = vmatpush.bf16.msrb.mxu2 %v1946_v8  ;;  %v738_v34 = vand.u32 2147483647, %v2318_v53  ;;  %v774_v45 = vsel %vm766_vm13, %v2634_v13, %v758_v1 }
  0xfb   :  { %v698_v6 = vmul.f32 0.6931472, %v2320_v57  ;;  %1278 = vmatpush.bf16.msrb.mxu3 %v2018_v16 }
  0xfc   :  { %2323 = vlog2.f32 %v732_v52  ;;  %v2322_v17 = vpop.eup %2321  ;;  %v736_v21 = vadd.f32 1.0, %v735_v7  ;;  %vm739_vm12 = vcmp.lt.f32.partialorder %v738_v34, 0.0004427343 }
  0xfd   :  { %v704_v20 = vsel %vm2728_vm10, %v701_v11, %v698_v6  ;;  %v725_v27 = vmul.f32 0.6931472, %v2322_v17  ;;  %v2275_v6 = vld [vmem:[#allocation10 + $0x70] sm:$0xff] }
  0xfe   :  { %v744_v24 = vadd.f32 %v704_v20, %v632_v22  ;;  %v737_v3 = vmul.f32 %v2318_v53, %v736_v21  ;;  %1511 = vmatpush.bf16.msra.mxu1 %v2275_v6  ;;  %v2273_v22 = vld [vmem:[#allocation10 + $0x60] sm:$0xff] }
  0xff   :  { %v731_v30 = vsel %vm730_vm11, %v728_v28, %v725_v27  ;;  %1279 = vmatpush.bf16.msrb.mxu3 %v2010_v25 }
 0x100   :  { %1252 = vmatmul.bf16.vlgmr.msrb.gmra.mxu1 %v2714_v29  ;;  %v747_v33 = vadd.f32 %v731_v30, %v635_v32  ;;  %v759_v44 = vmul.f32 %v2639_v19, %v744_v24  ;;  %v2272_v24 = vld [vmem:[#allocation10 + $0x58] sm:$0xff] }
 0x102   :  { %v2324_v14 = vpop.eup %2323  ;;  %v762_v23 = vmul.f32 %v2639_v19, %v747_v33  ;;  %v775_v49 = vsel %vm767_vm15, %v2667_v5, %v759_v44  ;;  %v850_v5 = vperm.slane %v2753_v39, 0  ;;  %1512 = vmatpush.bf16.msra.mxu1 %v2274_v60  ;;  %v2271_v44 = vld [vmem:[#allocation10 + $0x50] sm:$0xff] }
 0x103   :  { %v734_v37 = vmul.f32 0.6931472, %v2324_v14 }
 0x104   :  { %v778_v47 = vsel %vm770_vm14, %v2686_v35, %v762_v23  ;;  %v2267_v35 = vld [vmem:[#allocation10 + $0x30] sm:$0xff] }
 0x105   :  { %v740_v43 = vsel %vm739_vm12, %v737_v3, %v734_v37  ;;  %v782_v40 = vpack.c.bf16 %v778_v47, %v774_v45  ;;  %1497 = vmatpush.bf16.msra.mxu0 %v2267_v35 }
 0x106   :  { %v748_v29 = vadd.f32 %v740_v43, %v636_v62  ;;  %1513 = vmatpush.bf16.msra.mxu1 %v2273_v22 }
 0x107   :  { %1210 = vmatmul.bf16.vlgmr.msra.gmra.mxu2 %v782_v40 }
 0x108   :  { %v763_v31 = vmul.f32 %v2639_v19, %v748_v29 }
 0x109   :  { %1498 = vmatpush.bf16.msra.mxu0 %v2266_v61 }
 0x10a   :  { %v779_v26 = vsel %vm771_vm0, %v2696_v36, %v763_v31  ;;  %1514 = vmatpush.bf16.msra.mxu1 %v2272_v24 }
 0x10b   :  { %v783_v50 = vpack.c.bf16 %v779_v26, %v775_v49  ;;  %v2270_v26 = vld [vmem:[#allocation10 + $0x48] sm:$0xff] }
 0x10d   :  { %1224 = vmatmul.bf16.vlgmr.msra.gmra.mxu3 %v783_v50  ;;  %1499 = vmatpush.bf16.msra.mxu0 %v2265_v46 }
 0x10e   :  { %1515 = vmatpush.bf16.msra.mxu1 %v2271_v44 }
 0x111   :  { %1500 = vmatpush.bf16.msra.mxu0 %v2264_v42 }
 0x112   :  { %1516 = vmatpush.bf16.msra.mxu1 %v2270_v26  ;;  %v2290_v26 = vld [vmem:[%s2812_s6] ss:$0 sm:$0xff] }
 0x115   :  { %1501 = vmatpush.bf16.msra.mxu0 %v2263_v4 }
 0x117   :  { %1266 = vmatmul.bf16.vlgmr.msrb.gmra.mxu2 %v782_v40 }
 0x119   :  { %1502 = vmatpush.bf16.msra.mxu0 %v2262_v15 }
 0x11d   :  { %1280 = vmatmul.bf16.vlgmr.msrb.gmra.mxu3 %v783_v50  ;;  %1503 = vmatpush.bf16.msra.mxu0 %v2261_v55 }
 0x163   :  { %v1183_v13 = vpop.f32.mrf.mxu0 }
 0x164   :  { %v1184_v36 = vadd.f32 %v1183_v13, %v850_v5 }
 0x16b   :  { %v1185_v53 = vpop.f32.mrf.mxu0 }
 0x16c   :  { %v1186_v52 = vadd.f32 %v1185_v53, %v850_v5 }
 0x16d   :  { %v1197_v12 = vpop.f32.mrf.mxu1 }
 0x16e   :  { %v1198_v54 = vadd.f32 %v1197_v12, %v1184_v36 }
 0x173   :  { %v1239_v2 = vpop.f32.mrf.mxu0 }
 0x174   :  { %v1240_v21 = vadd.f32 %v1239_v2, %v851_v9 }
 0x175   :  { %v1199_v38 = vpop.f32.mrf.mxu1 }
 0x176   :  { %v1200_v7 = vadd.f32 %v1199_v38, %v1186_v52 }
 0x17b   :  { %v1241_v30 = vpop.f32.mrf.mxu0 }
 0x17c   :  { %v1242_v23 = vadd.f32 %v1241_v30, %v851_v9 }
 0x17d   :  { %v1253_v16 = vpop.f32.mrf.mxu1 }
 0x17e   :  { %v1254_v27 = vadd.f32 %v1253_v16, %v1240_v21 }
 0x185   :  { %v1255_v3 = vpop.f32.mrf.mxu1 }
 0x186   :  { %v1256_v29 = vadd.f32 %v1255_v3, %v1242_v23 }
 0x18a   :  { %v1211_v56 = vpop.f32.mrf.mxu2 }
 0x18b   :  { %v1212_v57 = vadd.f32 %v1211_v56, %v1198_v54  ;;  %v2269_v54 = vld [vmem:[#allocation10 + $0x40] sm:$0xff] }
 0x18c   :  { %1517 = vmatpush.bf16.msra.mxu1 %v2269_v54 }
 0x190   :  { %v1225_v59 = vpop.f32.mrf.mxu3 }
 0x191   :  { %v2756_v63 = vadd.f32 %v1225_v59, %v1212_v57 }
 0x192   :  { %v1213_v41 = vpop.f32.mrf.mxu2 }
 0x193   :  { %v2759_v0 = vmul.f32 10.0, %v2756_v63  ;;  %v1214_v11 = vadd.f32 %v1213_v41, %v1200_v7 }
 0x195   :  { %v1294_v8 = vand.u32 2147483647, %v2759_v0  ;;  %v1290_v59 = vmax.f32 %v2759_v0, 0.0  ;;  %vm1354_vm3 = vcmp.gt.f32.partialorder %v2759_v0, 20.0 }
 0x197   :  { %v1298_v10 = vsub.f32 0.0, %v1294_v8 }
 0x198   :  { %v1227_v17 = vpop.f32.mrf.mxu3 }
 0x199   :  { %v1302_v18 = vmul.f32 1.442695, %v1298_v10  ;;  %v2763_v20 = vadd.f32 %v1227_v17, %v1214_v11 }
 0x19a   :  { %v1267_v34 = vpop.f32.mrf.mxu2 }
 0x19b   :  { %2325 = vpow2.f32 %v1302_v18  ;;  %v2766_v51 = vmul.f32 10.0, %v2763_v20  ;;  %v1268_v14 = vadd.f32 %v1267_v34, %v1254_v27 }
 0x19d   :  { %v1296_v28 = vand.u32 2147483647, %v2766_v51  ;;  %v1292_v10 = vmax.f32 %v2766_v51, 0.0  ;;  %vm1356_vm4 = vcmp.gt.f32.partialorder %v2766_v51, 20.0 }
 0x19f   :  { %v1300_v32 = vsub.f32 0.0, %v1296_v28 }
 0x1a0   :  { %v1281_v25 = vpop.f32.mrf.mxu3 }
 0x1a1   :  { %v2326_v1 = vpop.eup %2325  ;;  %v1306_v33 = vmul.f32 1.442695, %v1300_v32  ;;  %v2769_v37 = vadd.f32 %v1281_v25, %v1268_v14 }
 0x1a2   :  { %v1310_v62 = vadd.f32 1.0, %v2326_v1  ;;  %v1313_v45 = vmul.f32 -0.5, %v2326_v1  ;;  %v1269_v40 = vpop.f32.mrf.mxu2  ;;  %v1316_v5 = vand.u32 2147483647, %v2326_v1 }
 0x1a3   :  { %2327 = vpow2.f32 %v1306_v33  ;;  %v2772_v43 = vmul.f32 10.0, %v2769_v37  ;;  %v1270_v49 = vadd.f32 %v1269_v40, %v1256_v29 }
 0x1a4   :  { %2329 = vlog2.f32 %v1310_v62  ;;  %v1314_v13 = vadd.f32 1.0, %v1313_v45  ;;  %vm1317_vm1 = vcmp.lt.f32.partialorder %v1316_v5, 0.0004427343 }
 0x1a5   :  { %v1295_v47 = vand.u32 2147483647, %v2772_v43  ;;  %v1291_v0 = vmax.f32 %v2772_v43, 0.0  ;;  %vm1355_vm7 = vcmp.gt.f32.partialorder %v2772_v43, 20.0 }
 0x1a6   :  { %v1315_v56 = vmul.f32 %v2326_v1, %v1314_v13 }
 0x1a7   :  { %v1299_v31 = vsub.f32 0.0, %v1295_v47 }
 0x1a8   :  { %v1283_v50 = vpop.f32.mrf.mxu3 }
 0x1a9   :  { %v2328_v48 = vpop.eup %2327  ;;  %v1304_v35 = vmul.f32 1.442695, %v1299_v31  ;;  %v2775_v39 = vadd.f32 %v1283_v50, %v1270_v49 }
 0x1aa   :  { %v2330_v12 = vpop.eup %2329  ;;  %v1328_v61 = vadd.f32 1.0, %v2328_v48  ;;  %v1331_v46 = vmul.f32 -0.5, %v2328_v48  ;;  %v1334_v52 = vand.u32 2147483647, %v2328_v48 }
 0x1ab   :  { %v1312_v36 = vmul.f32 0.6931472, %v2330_v12  ;;  %2331 = vpow2.f32 %v1304_v35  ;;  %v2778_v53 = vmul.f32 10.0, %v2775_v39 }
 0x1ac   :  { %2333 = vlog2.f32 %v1328_v61  ;;  %v1332_v42 = vadd.f32 1.0, %v1331_v46  ;;  %vm1335_vm2 = vcmp.lt.f32.partialorder %v1334_v52, 0.0004427343 }
 0x1ad   :  { %v1297_v38 = vand.u32 2147483647, %v2778_v53  ;;  %v1318_v57 = vsel %vm1317_vm1, %v1315_v56, %v1312_v36  ;;  %vm1357_vm8 = vcmp.gt.f32.partialorder %v2778_v53, 20.0 }
 0x1ae   :  { %v1346_v8 = vadd.f32 %v1318_v57, %v1290_v59  ;;  %v1333_v9 = vmul.f32 %v2328_v48, %v1332_v42 }
 0x1af   :  { %v1301_v58 = vsub.f32 0.0, %v1297_v38 }
 0x1b0   :  { %v1350_v60 = vmul.f32 %v1346_v8, %v2639_v19 }
 0x1b1   :  { %v2332_v4 = vpop.eup %2331  ;;  %v1308_v6 = vmul.f32 1.442695, %v1301_v58 }
 0x1b2   :  { %v2334_v7 = vpop.eup %2333  ;;  %v1319_v41 = vadd.f32 1.0, %v2332_v4  ;;  %v1322_v15 = vmul.f32 -0.5, %v2332_v4  ;;  %v1358_v22 = vsel %vm1354_vm3, %v2756_v63, %v1350_v60  ;;  %v1325_v28 = vand.u32 2147483647, %v2332_v4 }
 0x1b3   :  { %v1330_v2 = vmul.f32 0.6931472, %v2334_v7  ;;  %2335 = vpow2.f32 %v1308_v6 }
 0x1b4   :  { %2337 = vlog2.f32 %v1319_v41  ;;  %v1323_v21 = vadd.f32 1.0, %v1322_v15  ;;  %vm1326_vm5 = vcmp.lt.f32.partialorder %v1325_v28, 0.0004427343 }
 0x1b5   :  { %v1336_v11 = vsel %vm1335_vm2, %v1333_v9, %v1330_v2 }
 0x1b6   :  { %v1348_v16 = vadd.f32 %v1336_v11, %v1292_v10  ;;  %v1324_v30 = vmul.f32 %v2332_v4, %v1323_v21 }
 0x1b8   :  { %v1352_v17 = vmul.f32 %v1348_v16, %v2639_v19 }
 0x1b9   :  { %v2336_v18 = vpop.eup %2335 }
 0x1ba   :  { %v2338_v55 = vpop.eup %2337  ;;  %v1360_v27 = vsel %vm1356_vm4, %v2763_v20, %v1352_v17  ;;  %v1337_v34 = vadd.f32 1.0, %v2336_v18  ;;  %v1340_v24 = vmul.f32 -0.5, %v2336_v18  ;;  %v1343_v51 = vand.u32 2147483647, %v2336_v18 }
 0x1bb   :  { %v1362_v32 = vpack.c.bf16 %v1360_v27, %v1358_v22  ;;  %v1321_v14 = vmul.f32 0.6931472, %v2338_v55  ;;  %v1293_v20 = vmax.f32 %v2778_v53, 0.0 }
 0x1bc   :  { %2339 = vlog2.f32 %v1337_v34  ;;  %v1341_v1 = vadd.f32 1.0, %v1340_v24  ;;  %vm1344_vm6 = vcmp.lt.f32.partialorder %v1343_v51, 0.0004427343 }
 0x1bd   :  { %1504 = vmatmul.bf16.vlgmr.msra.gmra.mxu0 %v1362_v32  ;;  %v1327_v25 = vsel %vm1326_vm5, %v1324_v30, %v1321_v14 }
 0x1be   :  { %v1347_v3 = vadd.f32 %v1327_v25, %v1291_v0  ;;  %v1342_v63 = vmul.f32 %v2336_v18, %v1341_v1 }
 0x1c0   :  { %v1351_v44 = vmul.f32 %v1347_v3, %v2639_v19 }
 0x1c2   :  { %v2340_v33 = vpop.eup %2339  ;;  %v1359_v47 = vsel %vm1355_vm7, %v2769_v37, %v1351_v44 }
 0x1c3   :  { %v1339_v62 = vmul.f32 0.6931472, %v2340_v33 }
 0x1c5   :  { %v1345_v23 = vsel %vm1344_vm6, %v1342_v63, %v1339_v62 }
 0x1c6   :  { %v1349_v29 = vadd.f32 %v1345_v23, %v1293_v20 }
 0x1c8   :  { %v1353_v45 = vmul.f32 %v1349_v29, %v2639_v19 }
 0x1ca   :  { %v1361_v40 = vsel %vm1357_vm8, %v2775_v39, %v1353_v45 }
 0x1cb   :  { %v1363_v31 = vpack.c.bf16 %v1361_v40, %v1359_v47 }
 0x1cd   :  { %1518 = vmatmul.bf16.vlgmr.msra.gmra.mxu1 %v1363_v31 }
 0x23a   :  { %v1505_v49 = vpop.f32.mrf.mxu0 }
 0x23b   :  { %v1506_v50 = vadd.f32 %v2290_v26, %v1505_v49 }
 0x242   :  { %v1507_v19 = vpop.f32.mrf.mxu0 }
 0x243   :  { %v1508_v37 = vadd.f32 %v2290_v26, %v1507_v19 }
 0x24a   :  { %v1519_v48 = vpop.f32.mrf.mxu1 }
 0x24b   :  { %v1520_v13 = vadd.f32 %v1519_v48, %v1506_v50 }
 0x24d   :  { %1524 = vst [vmem:[#allocation11] sm:$0xff] %v1520_v13 }
 0x252   :  { %v1521_v43 = vpop.f32.mrf.mxu1 }
 0x253   :  { %v1522_v35 = vadd.f32 %v1521_v43, %v1508_v37 }
 0x255   :  { %1525 = vst [vmem:[#allocation11 + $0x8] sm:$0xff] %v1522_v35 }
 0x256   :  { %1538 = dma.vmem_to_hbm [thread:$0]  %s1531_s8, 256, %s1533_s11, [#allocation4], %s2497_s1, %s2497_s1, %s2498_s16  }
 0x257   :  { %2491 = dma.done.wait [#allocation4], 256  }
 0x258   :  { %2492 = vsyncadd [#allocation4], 4294967040 }
 0x259   :  { %1543 = vsyncpa [#allocation3], 1 }
 0x25a   :  { %1544 = vsyncpa [#allocation6], 1 }
 0x25b   :  { %1545 = vsyncpa [#allocation9], 1 }
 0x25c   :  { %1546 = vsyncpa [#allocation4], 1 }

</bundles_post_ra>
